<compile_context>
chip_gen: v5e
topology: v5e:2x2
jax: 0.10.0
libtpu: 0.0.40
codegen_flags: <defaults>
</compile_context>

<pallas_src>
import jax
import jax.numpy as jnp
from jax.experimental import pallas as pl
from jax.experimental.pallas import tpu as pltpu

N_OUT = 10          # packed output columns
N_GROUPS = 7        # head-input groups (4 FollowingPredictor + 3 depth/target)
GROUP_PAD = 128     # head-input width: N_GROUPS * JOINT padded to one lane tile
ROW_ALIGN = 16      # weight-slab row alignment (bf16 sublane tile)

# Head group -> output column mapping (fixed):
#   g0: p_embed * content_f * FU(c)        -> sigmoid -> out[0] p_followed_true
#   g1: p_embed * content_f * FU(p_other)  -> sigmoid -> out[1]
#   g2: c_embed * content_f * FU(c_other)  -> sigmoid -> out[2]
#   g3: r_embed * content_f * FU(r_other)  -> sigmoid -> out[3]
#   g4: p_embed * content_p                -> exp     -> out[4] p_value
#   g5: c_embed * content_p                -> exp     -> out[5] c_value
#   g6: r_embed * content_p                -> exp     -> out[6] r_value
#   g6 also feeds TreeSize/MaxDepth/AvgDepth ->          out[7], out[8], out[9]


# ----------------------------------------------------------------------------
# Kernel
# ----------------------------------------------------------------------------
def _make_kernel(layout):
    su_layers, fu_layers, ce_layers, head_layers = layout

    def kernel(su_ref, fu_ref, ct_ref, w_ref, b_ref, out_ref):
        def chain(x, layers):
            """Linear(+folded BN) -> ReLU chain; last layer is Linear only.
            Weights are static slices of the packed bf16 slab; matmuls
            accumulate in f32."""
            h = x
            last = len(layers) - 1
            for i, (row, k, n, brow) in enumerate(layers):
                w = w_ref[row:row + k, 0:n]            # bf16 (k, n)
                b = b_ref[brow:brow + 1, 0:n]          # f32  (1, n)
                z = jnp.dot(h.astype(jnp.bfloat16), w,
                            preferred_element_type=jnp.float32) + b
                h = jnp.maximum(z, 0.0) if i < last else z
            return h

        # text[text != text] = 0 ; image[image != image] = 0
        content = ct_ref[...]
        content = jnp.where(content != content, 0.0, content)

        # Embedder chains.  Their final (prep-time) layers already emit the
        # per-group duplicated columns, padded to 128 lanes.
        su_dup = chain(su_ref[...], su_layers)                   # (tb, 128)
        fu_dup = chain(fu_ref[...], fu_layers)                   # (tb, 128)
        ce_sig = jax.nn.sigmoid(chain(content, ce_layers))       # (tb, 256)
        content_dup = (ce_sig[:, 0:GROUP_PAD] *
                       ce_sig[:, GROUP_PAD:2 * GROUP_PAD])       # (tb, 128)

        head_in = su_dup * content_dup * fu_dup                  # (tb, 128)
        z = chain(head_in, head_layers)                          # (tb, 10)

        # Per-column output activation: sigmoid (0-3), exp (4-6), identity (7-9)
        col = jax.lax.broadcasted_iota(jnp.int32, z.shape, 1)
        out_ref[...] = jnp.where(col < 4, jax.nn.sigmoid(z),
                                 jnp.where(col < 7, jnp.exp(z), z))

    return kernel


# ----------------------------------------------------------------------------
# Wrapper
# ----------------------------------------------------------------------------
def _pick_batch_tile(batch):
    # Tiny batch -> one program.  Otherwise >= 2 programs (v7x megacore) with
    # tiles as large as possible (<= 1024) to amortize per-step overhead on
    # single-TensorCore v5e/v6e.  VMEM is never a constraint for this model.
    if batch < 16 or batch % 8:
        return batch
    tile = min(1024, batch // 2)
    tile -= tile % 8
    while tile >= 8 and batch % tile:
        tile -= 8
    return tile if tile >= 8 else batch


def feature_model_forward(packed_params, r_vector, p_vector, c_vector,
                          r_vector_other, p_vector_other, c_vector_other,
                          image, text, *, batch_tile=None):
    w_slab, b_slab, layout = packed_params
    batch = r_vector.shape[0]
    tile = _pick_batch_tile(batch) if batch_tile is None else batch_tile
    assert batch % tile == 0

    # Lane-pack the activations into three dense slabs (3 DMA streams instead
    # of 8).  Ordering makes every in-kernel use a direct full-block read.
    su_users = jnp.concatenate([r_vector, p_vector, c_vector], axis=1)
    fu_users = jnp.concatenate([c_vector, p_vector_other, c_vector_other,
                                r_vector_other], axis=1)
    content = jnp.concatenate([image, text], axis=1)

    def act_spec(a):
        return pl.BlockSpec((tile, a.shape[1]), lambda i: (i, 0))

    def full_spec(a):
        return pl.BlockSpec(a.shape, lambda i: (0, 0))

    packed = pl.pallas_call(
        _make_kernel(layout),
        out_shape=jax.ShapeDtypeStruct((batch, N_OUT), jnp.float32),
        grid=(batch // tile,),
        in_specs=[act_spec(su_users), act_spec(fu_users), act_spec(content),
                  full_spec(w_slab), full_spec(b_slab)],
        out_specs=pl.BlockSpec((tile, N_OUT), lambda i: (i, 0)),
        compiler_params=pltpu.CompilerParams(
            dimension_semantics=("parallel",)),
    )(su_users, fu_users, content, w_slab, b_slab)

    p_followed_true = packed[:, 0:1]
    p_followed_false = [packed[:, 1:2], packed[:, 2:3], packed[:, 3:4]]
    p_value, c_value, r_value = packed[:, 4:5], packed[:, 5:6], packed[:, 6:7]
    tree_size, max_depth, avg_depth = (packed[:, 7:8], packed[:, 8:9],
                                       packed[:, 9:10])
    return (p_followed_true, p_followed_false, p_value, c_value, r_value,
            tree_size, max_depth, avg_depth)


# ----------------------------------------------------------------------------
# Parameter construction: raw PyTorch-style params -> BN fold -> block-diag
# merged nets -> packed bf16/f32 slabs + static layout.
# ----------------------------------------------------------------------------
def _linear_init(key, fan_in, fan_out):
    bound = float(fan_in) ** -0.5
    kw, kb = jax.random.split(key)
    w = jax.random.uniform(kw, (fan_in, fan_out), jnp.float32, -bound, bound)
    b = jax.random.uniform(kb, (1, fan_out), jnp.float32, -bound, bound)
    return w, b


def init_nn(key, in_dim, hidden, out_dim, n_hidden):
    """Raw params of one PyTorch NeuralNetwork (Linears + BatchNorm1d stats)."""
    keys = jax.random.split(key, n_hidden + 2)
    linears = [_linear_init(keys[0], in_dim, hidden)]
    bns = []
    for i in range(n_hidden):
        linears.append(_linear_init(keys[1 + i], hidden, hidden))
        # gamma, beta, running_mean, running_var (fresh BatchNorm1d)
        bns.append((jnp.ones((1, hidden)), jnp.zeros((1, hidden)),
                    jnp.zeros((1, hidden)), jnp.ones((1, hidden))))
    linears.append(_linear_init(keys[-1], hidden, out_dim))
    return {"linears": linears, "bns": bns}


def fold_nn(nn, eps=1e-5):
    """Fold eval-mode BatchNorm1d (Linear->BN->ReLU) into the hidden Linear."""
    linears, bns = nn["linears"], nn["bns"]
    folded = [linears[0]]
    for i, (gamma, beta, mean, var) in enumerate(bns):
        w, b = linears[1 + i]
        scale = gamma * jax.lax.rsqrt(var + eps)
        folded.append((w * scale, b * scale + (beta - mean * scale)))
    folded.append(linears[-1])
    return folded


def _compose(in_dim, out_dim, w_blocks, b_blocks):
    """Assemble a merged layer from (row_off, col_off, W) / (col_off, b) blocks."""
    w = jnp.zeros((in_dim, out_dim), jnp.float32)
    for r, c, blk in w_blocks:
        w = w.at[r:r + blk.shape[0], c:c + blk.shape[1]].set(blk)
    b = jnp.zeros((1, out_dim), jnp.float32)
    for c, blk in b_blocks:
        b = b.at[:, c:c + blk.shape[1]].set(blk)
    return w, b


def build_merged_nets(raw, user_size, image_embed, text_embed, hidden, joint):
    U, H, J, G = user_size, hidden, joint, N_GROUPS
    assert G * J <= GROUP_PAD, "JOINT too large for the 128-lane group pad"

    su, fu = fold_nn(raw["su"]), fold_nn(raw["fu"])
    # hidden block order: [follow_img, pred_img, follow_txt, pred_txt]
    ce_nets = [fold_nn(raw["cf_img"]), fold_nn(raw["cp_img"]),
               fold_nn(raw["cf_txt"]), fold_nn(raw["cp_txt"])]
    fp, dp = fold_nn(raw["fp"]), fold_nn(raw["dp"])
    tree, maxd, avgd = (fold_nn(raw["tree"]), fold_nn(raw["maxd"]),
                        fold_nn(raw["avgd"]))

    # Which StartUser copy ([r, p, c] = 0, 1, 2) feeds each head group, and
    # which content embedder (0 = Following, 1 = Prediction).
    SU_SRC = (1, 1, 2, 0, 1, 2, 0)
    CE_SRC = (0, 0, 0, 0, 1, 1, 1)

    def replicate(net_layers, n_copies, in_dim0):
        """Block-diagonal column-stack of n_copies of a folded NN (all layers
        except its final one)."""
        w0, b0 = net_layers[0]
        out = [_compose(n_copies * in_dim0, n_copies * H,
                        [(k * in_dim0, k * H, w0) for k in range(n_copies)],
                        [(k * H, b0) for k in range(n_copies)])]
        for w, b in net_layers[1:-1]:
            out.append(_compose(n_copies * H, n_copies * H,
                                [(k * H, k * H, w) for k in range(n_copies)],
                                [(k * H, b) for k in range(n_copies)]))
        return out

    # --- StartUserEmbedder x3 over [r, p, c]; final layer writes each group's
    #     embedding copy into its head-group column slot (padded to 128).
    su_layers = replicate(su, 3, U)
    w_last, b_last = su[-1]
    su_layers.append(_compose(
        3 * H, GROUP_PAD,
        [(SU_SRC[g] * H, g * J, w_last) for g in range(G)],
        [(g * J, b_last) for g in range(G)]))

    # --- FollowerUserEmbedder x4 over [c, p_other, c_other, r_other];
    #     groups 4-6 (depth/target heads) get a constant 1.0 factor instead.
    fu_layers = replicate(fu, 4, U)
    w_last, b_last = fu[-1]
    ones_b = jnp.ones((1, J), jnp.float32)
    fu_layers.append(_compose(
        4 * H, GROUP_PAD,
        [(g * H, g * J, w_last) for g in range(4)],
        [(g * J, b_last) for g in range(4)]
        + [(g * J, ones_b) for g in range(4, G)]))

    # --- All four content NNs as one chain over [image | text].
    in_offs = (0, 0, image_embed, image_embed)
    ce_layers = [_compose(
        image_embed + text_embed, 4 * H,
        [(in_offs[k], k * H, ce_nets[k][0][0]) for k in range(4)],
        [(k * H, ce_nets[k][0][1]) for k in range(4)])]
    for li in range(1, 5):
        ce_layers.append(_compose(
            4 * H, 4 * H,
            [(k * H, k * H, ce_nets[k][li][0]) for k in range(4)],
            [(k * H, ce_nets[k][li][1]) for k in range(4)]))
    # final layer: [img-part per group | pad] ++ [txt-part per group | pad];
    # the two 128-wide halves are sigmoided and multiplied in-kernel.
    wb, bb = [], []
    for half in range(2):                     # 0 = image nets, 1 = text nets
        for g in range(G):
            net_idx = 2 * half + CE_SRC[g]
            w_l, b_l = ce_nets[net_idx][-1]
            wb.append((net_idx * H, half * GROUP_PAD + g * J, w_l))
            bb.append((half * GROUP_PAD + g * J, b_l))
    ce_layers.append(_compose(4 * H, 2 * GROUP_PAD, wb, bb))

    # --- Merged head: FollowingPredictor x4 + Depth x3 + TreeSize + MaxDepth +
    #     AvgDepth; column order == packed output order.
    units = [(fp, 0), (fp, 1), (fp, 2), (fp, 3),
             (dp, 4), (dp, 5), (dp, 6),
             (tree, 6), (maxd, 6), (avgd, 6)]
    nu = len(units)
    head_layers = [
        _compose(GROUP_PAD, nu * H,
                 [(grp * J, u * H, net[0][0]) for u, (net, grp) in enumerate(units)],
                 [(u * H, net[0][1]) for u, (net, grp) in enumerate(units)]),
        _compose(nu * H, nu * H,
                 [(u * H, u * H, net[1][0]) for u, (net, grp) in enumerate(units)],
                 [(u * H, net[1][1]) for u, (net, grp) in enumerate(units)]),
        _compose(nu * H, nu,
                 [(u * H, u, net[2][0]) for u, (net, grp) in enumerate(units)],
                 [(u, net[2][1]) for u, (net, grp) in enumerate(units)]),
    ]
    return su_layers, fu_layers, ce_layers, head_layers


def _round_up(x, m):
    return (x + m - 1) // m * m


def pack_params(nets):
    """Pack all merged layers into one bf16 weight slab (16-aligned row blocks
    at lane offset 0) + one f32 bias slab (one row per layer).  Returns
    (w_slab, b_slab, layout) with static (row, K, N, bias_row) per layer."""
    all_layers = [lyr for net in nets for lyr in net]
    max_n = max(w.shape[1] for w, _ in all_layers)
    total_rows = sum(_round_up(w.shape[0], ROW_ALIGN) for w, _ in all_layers)
    w_slab = jnp.zeros((total_rows, max_n), jnp.float32)
    b_slab = jnp.zeros((len(all_layers), max_n), jnp.float32)
    layout, row, li = [], 0, 0
    for net in nets:
        net_layout = []
        for w, b in net:
            k, n = w.shape
            w_slab = w_slab.at[row:row + k, 0:n].set(w)
            b_slab = b_slab.at[li, 0:n].set(b[0])
            net_layout.append((row, k, n, li))
            row += _round_up(k, ROW_ALIGN)
            li += 1
        layout.append(tuple(net_layout))
    return w_slab.astype(jnp.bfloat16), b_slab, tuple(layout)


def prepare_params(key, user_size, image_embed, text_embed, hidden, joint):
    keys = jax.random.split(key, 11)
    dims = {"su": (user_size, joint, 4), "fu": (user_size, joint, 4),
            "cf_img": (image_embed, joint, 4), "cf_txt": (text_embed, joint, 4),
            "cp_img": (image_embed, joint, 4), "cp_txt": (text_embed, joint, 4),
            "fp": (joint, 1, 1), "dp": (joint, 1, 1), "tree": (joint, 1, 1),
            "maxd": (joint, 1, 1), "avgd": (joint, 1, 1)}
    raw = {name: init_nn(k, d[0], hidden, d[1], d[2])
           for (name, d), k in zip(dims.items(), keys)}
    nets = build_merged_nets(raw, user_size, image_embed, text_embed,
                             hidden, joint)
    return raw, pack_params(nets)


# ----------------------------------------------------------------------------
# Pure-JAX eval-mode reference of the original module (for verification).
# ----------------------------------------------------------------------------
def _ref_nn(x, nn_params, eps=1e-5):
    def lin(h, w, b):   # mirror the kernel's bf16 weights
        return h @ w.astype(jnp.bfloat16).astype(jnp.float32) + b
    linears, bns = nn_params["linears"], nn_params["bns"]
    h = jnp.maximum(lin(x, *linears[0]), 0.0)
    for (w, b), (gamma, beta, mean, var) in zip(linears[1:-1], bns):
        z = lin(h, w, b)
        z = (z - mean) * (gamma * jax.lax.rsqrt(var + eps)) + beta
        h = jnp.maximum(z, 0.0)
    return lin(h, *linears[-1])


def ref_forward(raw, r, p, c, r_o, p_o, c_o, image, text):
    image = jnp.where(image != image, 0.0, image)
    text = jnp.where(text != text, 0.0, text)
    r_e, p_e, c_e = (_ref_nn(r, raw["su"]), _ref_nn(p, raw["su"]),
                     _ref_nn(c, raw["su"]))
    cf = (jax.nn.sigmoid(_ref_nn(image, raw["cf_img"])) *
          jax.nn.sigmoid(_ref_nn(text, raw["cf_txt"])))
    fpred = lambda x: jax.nn.sigmoid(_ref_nn(x, raw["fp"]))
    p_true = fpred(p_e * cf * _ref_nn(c, raw["fu"]))
    p_false = [fpred(p_e * cf * _ref_nn(p_o, raw["fu"])),
               fpred(c_e * cf * _ref_nn(c_o, raw["fu"])),
               fpred(r_e * cf * _ref_nn(r_o, raw["fu"]))]
    cp = (jax.nn.sigmoid(_ref_nn(image, raw["cp_img"])) *
          jax.nn.sigmoid(_ref_nn(text, raw["cp_txt"])))
    p_value = jnp.exp(_ref_nn(p_e * cp, raw["dp"]))
    c_value = jnp.exp(_ref_nn(c_e * cp, raw["dp"]))
    r_value = jnp.exp(_ref_nn(r_e * cp, raw["dp"]))
    target_in = r_e * cp
    return (p_true, p_false, p_value, c_value, r_value,
            _ref_nn(target_in, raw["tree"]), _ref_nn(target_in, raw["maxd"]),
            _ref_nn(target_in, raw["avgd"]))


# ----------------------------------------------------------------------------
if __name__ == "__main__":
    B, USER, IMG, TXT, HIDDEN, JOINT = 8, 32, 32, 24, 32, 16

    key = jax.random.PRNGKey(0)
    k_param, k_in = jax.random.split(key)
    raw, packed_params = prepare_params(k_param, USER, IMG, TXT, HIDDEN, JOINT)

    ks = jax.random.split(k_in, 8)
    r_vector = jax.random.normal(ks[0], (B, USER), jnp.float32)
    p_vector = jax.random.normal(ks[1], (B, USER), jnp.float32)
    c_vector = jax.random.normal(ks[2], (B, USER), jnp.float32)
    r_vector_other = jax.random.normal(ks[3], (B, USER), jnp.float32)
    p_vector_other = jax.random.normal(ks[4], (B, USER), jnp.float32)
    c_vector_other = jax.random.normal(ks[5], (B, USER), jnp.float32)
    image = jax.random.normal(ks[6], (B, IMG), jnp.float32)
    text = jax.random.normal(ks[7], (B, TXT), jnp.float32)
    # exercise the `x[x != x] = 0` NaN-cleaning path
    image = image.at[0, 3].set(jnp.nan)
    text = text.at[1, 5].set(jnp.nan)

    outs = feature_model_forward(packed_params, r_vector, p_vector, c_vector,
                                 r_vector_other, p_vector_other,
                                 c_vector_other, image, text)
    jax.block_until_ready(outs)

    refs = ref_forward(raw, r_vector, p_vector, c_vector, r_vector_other,
                       p_vector_other, c_vector_other, image, text)

    def flat(t):
        head, false_list, *rest = t
        return [head] + list(false_list) + list(rest)

    for got, want in zip(flat(outs), flat(refs)):
        assert got.shape == (B, 1)
        assert bool(jnp.all(jnp.isfinite(got)))
        err = float(jnp.max(jnp.abs(got - want)))
        assert bool(jnp.allclose(got, want, rtol=5e-2, atol=5e-2)), err

    p_true, p_false = outs[0], outs[1]
    for v in [p_true] + p_false:                       # sigmoid heads
        assert bool(jnp.all((v >= 0.0) & (v <= 1.0)))
    for v in outs[2:5]:                                # exp heads
        assert bool(jnp.all(v > 0.0))

    print("KERNEL_OK")
</pallas_src>

<mosaic_0001>
module attributes {stable_mosaic.version = 11 : i64} {
  func.func @kernel(%arg0: i32, %arg1: memref<8x96xf32, #tpu.memory_space<vmem>>, %arg2: memref<8x128xf32, #tpu.memory_space<vmem>>, %arg3: memref<8x56xf32, #tpu.memory_space<vmem>>, %arg4: memref<2816x320xbf16, #tpu.memory_space<vmem>>, %arg5: memref<21x320xf32, #tpu.memory_space<vmem>>, %arg6: memref<8x10xf32, #tpu.memory_space<vmem>>) attributes {dimension_semantics = [#tpu.dimension_semantics<parallel>], iteration_bounds = array<i64: 1>, scalar_prefetch = 0 : i64, scratch_operands = 0 : i64, tpu.core_type = #tpu.core_type<tc>, window_params = [{transform_indices = @transform_0, window_bounds = array<i64: 8, 96>}, {transform_indices = @transform_1, window_bounds = array<i64: 8, 128>}, {transform_indices = @transform_2, window_bounds = array<i64: 8, 56>}, {pipeline_mode = #tpu.pipeline_mode<synchronous>, transform_indices = @transform_3, window_bounds = array<i64: 2816, 320>}, {pipeline_mode = #tpu.pipeline_mode<synchronous>, transform_indices = @transform_4, window_bounds = array<i64: 21, 320>}, {transform_indices = @transform_5, window_bounds = array<i64: 8, 10>}]} {
    %c0 = arith.constant 0 : index
    %c0_0 = arith.constant 0 : index
    %0 = vector.load %arg3[%c0, %c0_0] : memref<8x56xf32, #tpu.memory_space<vmem>>, vector<8x56xf32>
    %1 = arith.cmpf one, %0, %0 : vector<8x56xf32>
    %cst = arith.constant 0.000000e+00 : f32
    %2 = vector.broadcast %cst : f32 to vector<8x56xf32>
    %3 = arith.select %1, %2, %0 : vector<8x56xi1>, vector<8x56xf32>
    %c0_1 = arith.constant 0 : index
    %c0_2 = arith.constant 0 : index
    %4 = vector.load %arg1[%c0_1, %c0_2] : memref<8x96xf32, #tpu.memory_space<vmem>>, vector<8x96xf32>
    %c0_3 = arith.constant 0 : index
    %c0_4 = arith.constant 0 : index
    %5 = vector.load %arg4[%c0_3, %c0_4] : memref<2816x320xbf16, #tpu.memory_space<vmem>>, vector<96x96xbf16>
    %c0_5 = arith.constant 0 : index
    %c0_6 = arith.constant 0 : index
    %6 = vector.load %arg5[%c0_5, %c0_6] : memref<21x320xf32, #tpu.memory_space<vmem>>, vector<1x96xf32>
    %7 = arith.truncf %4 : vector<8x96xf32> to vector<8x96xbf16>
    %cst_7 = arith.constant dense<0.000000e+00> : vector<8x96xf32>
    %8 = tpu.matmul %7, %5, %cst_7 {dimension_numbers = #tpu.dot_dimension_numbers<[1], [0], [0], [1], [0, 0, 1, 1], [], []>} : vector<8x96xbf16>, vector<96x96xbf16>, vector<8x96xf32> -> vector<8x96xf32>
    %9 = vector.broadcast %6 : vector<1x96xf32> to vector<8x96xf32>
    %10 = arith.addf %8, %9 : vector<8x96xf32>
    %cst_8 = arith.constant 0.000000e+00 : f32
    %11 = vector.broadcast %cst_8 : f32 to vector<8x96xf32>
    %12 = arith.maximumf %10, %11 : vector<8x96xf32>
    %c96 = arith.constant 96 : index
    %c0_9 = arith.constant 0 : index
    %13 = vector.load %arg4[%c96, %c0_9] : memref<2816x320xbf16, #tpu.memory_space<vmem>>, vector<96x96xbf16>
    %c1 = arith.constant 1 : index
    %c0_10 = arith.constant 0 : index
    %14 = vector.load %arg5[%c1, %c0_10] : memref<21x320xf32, #tpu.memory_space<vmem>>, vector<1x96xf32>
    %15 = arith.truncf %12 : vector<8x96xf32> to vector<8x96xbf16>
    %cst_11 = arith.constant dense<0.000000e+00> : vector<8x96xf32>
    %16 = tpu.matmul %15, %13, %cst_11 {dimension_numbers = #tpu.dot_dimension_numbers<[1], [0], [0], [1], [0, 0, 1, 1], [], []>} : vector<8x96xbf16>, vector<96x96xbf16>, vector<8x96xf32> -> vector<8x96xf32>
    %17 = vector.broadcast %14 : vector<1x96xf32> to vector<8x96xf32>
    %18 = arith.addf %16, %17 : vector<8x96xf32>
    %cst_12 = arith.constant 0.000000e+00 : f32
    %19 = vector.broadcast %cst_12 : f32 to vector<8x96xf32>
    %20 = arith.maximumf %18, %19 : vector<8x96xf32>
    %c192 = arith.constant 192 : index
    %c0_13 = arith.constant 0 : index
    %21 = vector.load %arg4[%c192, %c0_13] : memref<2816x320xbf16, #tpu.memory_space<vmem>>, vector<96x96xbf16>
    %c2 = arith.constant 2 : index
    %c0_14 = arith.constant 0 : index
    %22 = vector.load %arg5[%c2, %c0_14] : memref<21x320xf32, #tpu.memory_space<vmem>>, vector<1x96xf32>
    %23 = arith.truncf %20 : vector<8x96xf32> to vector<8x96xbf16>
    %cst_15 = arith.constant dense<0.000000e+00> : vector<8x96xf32>
    %24 = tpu.matmul %23, %21, %cst_15 {dimension_numbers = #tpu.dot_dimension_numbers<[1], [0], [0], [1], [0, 0, 1, 1], [], []>} : vector<8x96xbf16>, vector<96x96xbf16>, vector<8x96xf32> -> vector<8x96xf32>
    %25 = vector.broadcast %22 : vector<1x96xf32> to vector<8x96xf32>
    %26 = arith.addf %24, %25 : vector<8x96xf32>
    %cst_16 = arith.constant 0.000000e+00 : f32
    %27 = vector.broadcast %cst_16 : f32 to vector<8x96xf32>
    %28 = arith.maximumf %26, %27 : vector<8x96xf32>
    %c288 = arith.constant 288 : index
    %c0_17 = arith.constant 0 : index
    %29 = vector.load %arg4[%c288, %c0_17] : memref<2816x320xbf16, #tpu.memory_space<vmem>>, vector<96x96xbf16>
    %c3 = arith.constant 3 : index
    %c0_18 = arith.constant 0 : index
    %30 = vector.load %arg5[%c3, %c0_18] : memref<21x320xf32, #tpu.memory_space<vmem>>, vector<1x96xf32>
    %31 = arith.truncf %28 : vector<8x96xf32> to vector<8x96xbf16>
    %cst_19 = arith.constant dense<0.000000e+00> : vector<8x96xf32>
    %32 = tpu.matmul %31, %29, %cst_19 {dimension_numbers = #tpu.dot_dimension_numbers<[1], [0], [0], [1], [0, 0, 1, 1], [], []>} : vector<8x96xbf16>, vector<96x96xbf16>, vector<8x96xf32> -> vector<8x96xf32>
    %33 = vector.broadcast %30 : vector<1x96xf32> to vector<8x96xf32>
    %34 = arith.addf %32, %33 : vector<8x96xf32>
    %cst_20 = arith.constant 0.000000e+00 : f32
    %35 = vector.broadcast %cst_20 : f32 to vector<8x96xf32>
    %36 = arith.maximumf %34, %35 : vector<8x96xf32>
    %c384 = arith.constant 384 : index
    %c0_21 = arith.constant 0 : index
    %37 = vector.load %arg4[%c384, %c0_21] : memref<2816x320xbf16, #tpu.memory_space<vmem>>, vector<96x96xbf16>
    %c4 = arith.constant 4 : index
    %c0_22 = arith.constant 0 : index
    %38 = vector.load %arg5[%c4, %c0_22] : memref<21x320xf32, #tpu.memory_space<vmem>>, vector<1x96xf32>
    %39 = arith.truncf %36 : vector<8x96xf32> to vector<8x96xbf16>
    %cst_23 = arith.constant dense<0.000000e+00> : vector<8x96xf32>
    %40 = tpu.matmul %39, %37, %cst_23 {dimension_numbers = #tpu.dot_dimension_numbers<[1], [0], [0], [1], [0, 0, 1, 1], [], []>} : vector<8x96xbf16>, vector<96x96xbf16>, vector<8x96xf32> -> vector<8x96xf32>
    %41 = vector.broadcast %38 : vector<1x96xf32> to vector<8x96xf32>
    %42 = arith.addf %40, %41 : vector<8x96xf32>
    %cst_24 = arith.constant 0.000000e+00 : f32
    %43 = vector.broadcast %cst_24 : f32 to vector<8x96xf32>
    %44 = arith.maximumf %42, %43 : vector<8x96xf32>
    %c480 = arith.constant 480 : index
    %c0_25 = arith.constant 0 : index
    %45 = vector.load %arg4[%c480, %c0_25] : memref<2816x320xbf16, #tpu.memory_space<vmem>>, vector<96x128xbf16>
    %c5 = arith.constant 5 : index
    %c0_26 = arith.constant 0 : index
    %46 = vector.load %arg5[%c5, %c0_26] : memref<21x320xf32, #tpu.memory_space<vmem>>, vector<1x128xf32>
    %47 = arith.truncf %44 : vector<8x96xf32> to vector<8x96xbf16>
    %cst_27 = arith.constant dense<0.000000e+00> : vector<8x128xf32>
    %48 = tpu.matmul %47, %45, %cst_27 {dimension_numbers = #tpu.dot_dimension_numbers<[1], [0], [0], [1], [0, 0, 1, 1], [], []>} : vector<8x96xbf16>, vector<96x128xbf16>, vector<8x128xf32> -> vector<8x128xf32>
    %49 = vector.broadcast %46 : vector<1x128xf32> to vector<8x128xf32>
    %50 = arith.addf %48, %49 : vector<8x128xf32>
    %c0_28 = arith.constant 0 : index
    %c0_29 = arith.constant 0 : index
    %51 = vector.load %arg2[%c0_28, %c0_29] : memref<8x128xf32, #tpu.memory_space<vmem>>, vector<8x128xf32>
    %c576 = arith.constant 576 : index
    %c0_30 = arith.constant 0 : index
    %52 = vector.load %arg4[%c576, %c0_30] : memref<2816x320xbf16, #tpu.memory_space<vmem>>, vector<128x128xbf16>
    %c6 = arith.constant 6 : index
    %c0_31 = arith.constant 0 : index
    %53 = vector.load %arg5[%c6, %c0_31] : memref<21x320xf32, #tpu.memory_space<vmem>>, vector<1x128xf32>
    %54 = arith.truncf %51 : vector<8x128xf32> to vector<8x128xbf16>
    %cst_32 = arith.constant dense<0.000000e+00> : vector<8x128xf32>
    %55 = tpu.matmul %54, %52, %cst_32 {dimension_numbers = #tpu.dot_dimension_numbers<[1], [0], [0], [1], [0, 0, 1, 1], [], []>} : vector<8x128xbf16>, vector<128x128xbf16>, vector<8x128xf32> -> vector<8x128xf32>
    %56 = vector.broadcast %53 : vector<1x128xf32> to vector<8x128xf32>
    %57 = arith.addf %55, %56 : vector<8x128xf32>
    %cst_33 = arith.constant 0.000000e+00 : f32
    %58 = vector.broadcast %cst_33 : f32 to vector<8x128xf32>
    %59 = arith.maximumf %57, %58 : vector<8x128xf32>
    %c704 = arith.constant 704 : index
    %c0_34 = arith.constant 0 : index
    %60 = vector.load %arg4[%c704, %c0_34] : memref<2816x320xbf16, #tpu.memory_space<vmem>>, vector<128x128xbf16>
    %c7 = arith.constant 7 : index
    %c0_35 = arith.constant 0 : index
    %61 = vector.load %arg5[%c7, %c0_35] : memref<21x320xf32, #tpu.memory_space<vmem>>, vector<1x128xf32>
    %62 = arith.truncf %59 : vector<8x128xf32> to vector<8x128xbf16>
    %cst_36 = arith.constant dense<0.000000e+00> : vector<8x128xf32>
    %63 = tpu.matmul %62, %60, %cst_36 {dimension_numbers = #tpu.dot_dimension_numbers<[1], [0], [0], [1], [0, 0, 1, 1], [], []>} : vector<8x128xbf16>, vector<128x128xbf16>, vector<8x128xf32> -> vector<8x128xf32>
    %64 = vector.broadcast %61 : vector<1x128xf32> to vector<8x128xf32>
    %65 = arith.addf %63, %64 : vector<8x128xf32>
    %cst_37 = arith.constant 0.000000e+00 : f32
    %66 = vector.broadcast %cst_37 : f32 to vector<8x128xf32>
    %67 = arith.maximumf %65, %66 : vector<8x128xf32>
    %c832 = arith.constant 832 : index
    %c0_38 = arith.constant 0 : index
    %68 = vector.load %arg4[%c832, %c0_38] : memref<2816x320xbf16, #tpu.memory_space<vmem>>, vector<128x128xbf16>
    %c8 = arith.constant 8 : index
    %c0_39 = arith.constant 0 : index
    %69 = vector.load %arg5[%c8, %c0_39] : memref<21x320xf32, #tpu.memory_space<vmem>>, vector<1x128xf32>
    %70 = arith.truncf %67 : vector<8x128xf32> to vector<8x128xbf16>
    %cst_40 = arith.constant dense<0.000000e+00> : vector<8x128xf32>
    %71 = tpu.matmul %70, %68, %cst_40 {dimension_numbers = #tpu.dot_dimension_numbers<[1], [0], [0], [1], [0, 0, 1, 1], [], []>} : vector<8x128xbf16>, vector<128x128xbf16>, vector<8x128xf32> -> vector<8x128xf32>
    %72 = vector.broadcast %69 : vector<1x128xf32> to vector<8x128xf32>
    %73 = arith.addf %71, %72 : vector<8x128xf32>
    %cst_41 = arith.constant 0.000000e+00 : f32
    %74 = vector.broadcast %cst_41 : f32 to vector<8x128xf32>
    %75 = arith.maximumf %73, %74 : vector<8x128xf32>
    %c960 = arith.constant 960 : index
    %c0_42 = arith.constant 0 : index
    %76 = vector.load %arg4[%c960, %c0_42] : memref<2816x320xbf16, #tpu.memory_space<vmem>>, vector<128x128xbf16>
    %c9 = arith.constant 9 : index
    %c0_43 = arith.constant 0 : index
    %77 = vector.load %arg5[%c9, %c0_43] : memref<21x320xf32, #tpu.memory_space<vmem>>, vector<1x128xf32>
    %78 = arith.truncf %75 : vector<8x128xf32> to vector<8x128xbf16>
    %cst_44 = arith.constant dense<0.000000e+00> : vector<8x128xf32>
    %79 = tpu.matmul %78, %76, %cst_44 {dimension_numbers = #tpu.dot_dimension_numbers<[1], [0], [0], [1], [0, 0, 1, 1], [], []>} : vector<8x128xbf16>, vector<128x128xbf16>, vector<8x128xf32> -> vector<8x128xf32>
    %80 = vector.broadcast %77 : vector<1x128xf32> to vector<8x128xf32>
    %81 = arith.addf %79, %80 : vector<8x128xf32>
    %cst_45 = arith.constant 0.000000e+00 : f32
    %82 = vector.broadcast %cst_45 : f32 to vector<8x128xf32>
    %83 = arith.maximumf %81, %82 : vector<8x128xf32>
    %c1088 = arith.constant 1088 : index
    %c0_46 = arith.constant 0 : index
    %84 = vector.load %arg4[%c1088, %c0_46] : memref<2816x320xbf16, #tpu.memory_space<vmem>>, vector<128x128xbf16>
    %c10 = arith.constant 10 : index
    %c0_47 = arith.constant 0 : index
    %85 = vector.load %arg5[%c10, %c0_47] : memref<21x320xf32, #tpu.memory_space<vmem>>, vector<1x128xf32>
    %86 = arith.truncf %83 : vector<8x128xf32> to vector<8x128xbf16>
    %cst_48 = arith.constant dense<0.000000e+00> : vector<8x128xf32>
    %87 = tpu.matmul %86, %84, %cst_48 {dimension_numbers = #tpu.dot_dimension_numbers<[1], [0], [0], [1], [0, 0, 1, 1], [], []>} : vector<8x128xbf16>, vector<128x128xbf16>, vector<8x128xf32> -> vector<8x128xf32>
    %88 = vector.broadcast %85 : vector<1x128xf32> to vector<8x128xf32>
    %89 = arith.addf %87, %88 : vector<8x128xf32>
    %cst_49 = arith.constant 0.000000e+00 : f32
    %90 = vector.broadcast %cst_49 : f32 to vector<8x128xf32>
    %91 = arith.maximumf %89, %90 : vector<8x128xf32>
    %c1216 = arith.constant 1216 : index
    %c0_50 = arith.constant 0 : index
    %92 = vector.load %arg4[%c1216, %c0_50] : memref<2816x320xbf16, #tpu.memory_space<vmem>>, vector<128x128xbf16>
    %c11 = arith.constant 11 : index
    %c0_51 = arith.constant 0 : index
    %93 = vector.load %arg5[%c11, %c0_51] : memref<21x320xf32, #tpu.memory_space<vmem>>, vector<1x128xf32>
    %94 = arith.truncf %91 : vector<8x128xf32> to vector<8x128xbf16>
    %cst_52 = arith.constant dense<0.000000e+00> : vector<8x128xf32>
    %95 = tpu.matmul %94, %92, %cst_52 {dimension_numbers = #tpu.dot_dimension_numbers<[1], [0], [0], [1], [0, 0, 1, 1], [], []>} : vector<8x128xbf16>, vector<128x128xbf16>, vector<8x128xf32> -> vector<8x128xf32>
    %96 = vector.broadcast %93 : vector<1x128xf32> to vector<8x128xf32>
    %97 = arith.addf %95, %96 : vector<8x128xf32>
    %c1344 = arith.constant 1344 : index
    %c0_53 = arith.constant 0 : index
    %98 = vector.load %arg4[%c1344, %c0_53] : memref<2816x320xbf16, #tpu.memory_space<vmem>>, vector<56x128xbf16>
    %c12 = arith.constant 12 : index
    %c0_54 = arith.constant 0 : index
    %99 = vector.load %arg5[%c12, %c0_54] : memref<21x320xf32, #tpu.memory_space<vmem>>, vector<1x128xf32>
    %100 = arith.truncf %3 : vector<8x56xf32> to vector<8x56xbf16>
    %cst_55 = arith.constant dense<0.000000e+00> : vector<8x128xf32>
    %101 = tpu.matmul %100, %98, %cst_55 {dimension_numbers = #tpu.dot_dimension_numbers<[1], [0], [0], [1], [0, 0, 1, 1], [], []>} : vector<8x56xbf16>, vector<56x128xbf16>, vector<8x128xf32> -> vector<8x128xf32>
    %102 = vector.broadcast %99 : vector<1x128xf32> to vector<8x128xf32>
    %103 = arith.addf %101, %102 : vector<8x128xf32>
    %cst_56 = arith.constant 0.000000e+00 : f32
    %104 = vector.broadcast %cst_56 : f32 to vector<8x128xf32>
    %105 = arith.maximumf %103, %104 : vector<8x128xf32>
    %c1408 = arith.constant 1408 : index
    %c0_57 = arith.constant 0 : index
    %106 = vector.load %arg4[%c1408, %c0_57] : memref<2816x320xbf16, #tpu.memory_space<vmem>>, vector<128x128xbf16>
    %c13 = arith.constant 13 : index
    %c0_58 = arith.constant 0 : index
    %107 = vector.load %arg5[%c13, %c0_58] : memref<21x320xf32, #tpu.memory_space<vmem>>, vector<1x128xf32>
    %108 = arith.truncf %105 : vector<8x128xf32> to vector<8x128xbf16>
    %cst_59 = arith.constant dense<0.000000e+00> : vector<8x128xf32>
    %109 = tpu.matmul %108, %106, %cst_59 {dimension_numbers = #tpu.dot_dimension_numbers<[1], [0], [0], [1], [0, 0, 1, 1], [], []>} : vector<8x128xbf16>, vector<128x128xbf16>, vector<8x128xf32> -> vector<8x128xf32>
    %110 = vector.broadcast %107 : vector<1x128xf32> to vector<8x128xf32>
    %111 = arith.addf %109, %110 : vector<8x128xf32>
    %cst_60 = arith.constant 0.000000e+00 : f32
    %112 = vector.broadcast %cst_60 : f32 to vector<8x128xf32>
    %113 = arith.maximumf %111, %112 : vector<8x128xf32>
    %c1536 = arith.constant 1536 : index
    %c0_61 = arith.constant 0 : index
    %114 = vector.load %arg4[%c1536, %c0_61] : memref<2816x320xbf16, #tpu.memory_space<vmem>>, vector<128x128xbf16>
    %c14 = arith.constant 14 : index
    %c0_62 = arith.constant 0 : index
    %115 = vector.load %arg5[%c14, %c0_62] : memref<21x320xf32, #tpu.memory_space<vmem>>, vector<1x128xf32>
    %116 = arith.truncf %113 : vector<8x128xf32> to vector<8x128xbf16>
    %cst_63 = arith.constant dense<0.000000e+00> : vector<8x128xf32>
    %117 = tpu.matmul %116, %114, %cst_63 {dimension_numbers = #tpu.dot_dimension_numbers<[1], [0], [0], [1], [0, 0, 1, 1], [], []>} : vector<8x128xbf16>, vector<128x128xbf16>, vector<8x128xf32> -> vector<8x128xf32>
    %118 = vector.broadcast %115 : vector<1x128xf32> to vector<8x128xf32>
    %119 = arith.addf %117, %118 : vector<8x128xf32>
    %cst_64 = arith.constant 0.000000e+00 : f32
    %120 = vector.broadcast %cst_64 : f32 to vector<8x128xf32>
    %121 = arith.maximumf %119, %120 : vector<8x128xf32>
    %c1664 = arith.constant 1664 : index
    %c0_65 = arith.constant 0 : index
    %122 = vector.load %arg4[%c1664, %c0_65] : memref<2816x320xbf16, #tpu.memory_space<vmem>>, vector<128x128xbf16>
    %c15 = arith.constant 15 : index
    %c0_66 = arith.constant 0 : index
    %123 = vector.load %arg5[%c15, %c0_66] : memref<21x320xf32, #tpu.memory_space<vmem>>, vector<1x128xf32>
    %124 = arith.truncf %121 : vector<8x128xf32> to vector<8x128xbf16>
    %cst_67 = arith.constant dense<0.000000e+00> : vector<8x128xf32>
    %125 = tpu.matmul %124, %122, %cst_67 {dimension_numbers = #tpu.dot_dimension_numbers<[1], [0], [0], [1], [0, 0, 1, 1], [], []>} : vector<8x128xbf16>, vector<128x128xbf16>, vector<8x128xf32> -> vector<8x128xf32>
    %126 = vector.broadcast %123 : vector<1x128xf32> to vector<8x128xf32>
    %127 = arith.addf %125, %126 : vector<8x128xf32>
    %cst_68 = arith.constant 0.000000e+00 : f32
    %128 = vector.broadcast %cst_68 : f32 to vector<8x128xf32>
    %129 = arith.maximumf %127, %128 : vector<8x128xf32>
    %c1792 = arith.constant 1792 : index
    %c0_69 = arith.constant 0 : index
    %130 = vector.load %arg4[%c1792, %c0_69] : memref<2816x320xbf16, #tpu.memory_space<vmem>>, vector<128x128xbf16>
    %c16 = arith.constant 16 : index
    %c0_70 = arith.constant 0 : index
    %131 = vector.load %arg5[%c16, %c0_70] : memref<21x320xf32, #tpu.memory_space<vmem>>, vector<1x128xf32>
    %132 = arith.truncf %129 : vector<8x128xf32> to vector<8x128xbf16>
    %cst_71 = arith.constant dense<0.000000e+00> : vector<8x128xf32>
    %133 = tpu.matmul %132, %130, %cst_71 {dimension_numbers = #tpu.dot_dimension_numbers<[1], [0], [0], [1], [0, 0, 1, 1], [], []>} : vector<8x128xbf16>, vector<128x128xbf16>, vector<8x128xf32> -> vector<8x128xf32>
    %134 = vector.broadcast %131 : vector<1x128xf32> to vector<8x128xf32>
    %135 = arith.addf %133, %134 : vector<8x128xf32>
    %cst_72 = arith.constant 0.000000e+00 : f32
    %136 = vector.broadcast %cst_72 : f32 to vector<8x128xf32>
    %137 = arith.maximumf %135, %136 : vector<8x128xf32>
    %c1920 = arith.constant 1920 : index
    %c0_73 = arith.constant 0 : index
    %138 = vector.load %arg4[%c1920, %c0_73] : memref<2816x320xbf16, #tpu.memory_space<vmem>>, vector<128x256xbf16>
    %c17 = arith.constant 17 : index
    %c0_74 = arith.constant 0 : index
    %139 = vector.load %arg5[%c17, %c0_74] : memref<21x320xf32, #tpu.memory_space<vmem>>, vector<1x256xf32>
    %140 = arith.truncf %137 : vector<8x128xf32> to vector<8x128xbf16>
    %cst_75 = arith.constant dense<0.000000e+00> : vector<8x256xf32>
    %141 = tpu.matmul %140, %138, %cst_75 {dimension_numbers = #tpu.dot_dimension_numbers<[1], [0], [0], [1], [0, 0, 1, 1], [], []>} : vector<8x128xbf16>, vector<128x256xbf16>, vector<8x256xf32> -> vector<8x256xf32>
    %142 = vector.broadcast %139 : vector<1x256xf32> to vector<8x256xf32>
    %143 = arith.addf %141, %142 : vector<8x256xf32>
    %144 = arith.negf %143 : vector<8x256xf32>
    %145 = math.exp %144 : vector<8x256xf32>
    %cst_76 = arith.constant 1.000000e+00 : f32
    %146 = vector.broadcast %cst_76 : f32 to vector<8x256xf32>
    %147 = arith.addf %146, %145 : vector<8x256xf32>
    %148 = arith.divf %146, %147 : vector<8x256xf32>
    %149 = vector.extract_strided_slice %148 {offsets = [0, 0], sizes = [8, 128], strides = [1, 1]} : vector<8x256xf32> to vector<8x128xf32>
    %150 = vector.extract_strided_slice %148 {offsets = [0, 128], sizes = [8, 128], strides = [1, 1]} : vector<8x256xf32> to vector<8x128xf32>
    %151 = arith.mulf %149, %150 : vector<8x128xf32>
    %152 = arith.mulf %50, %151 : vector<8x128xf32>
    %153 = arith.mulf %152, %97 : vector<8x128xf32>
    %c2048 = arith.constant 2048 : index
    %c0_77 = arith.constant 0 : index
    %154 = vector.load %arg4[%c2048, %c0_77] : memref<2816x320xbf16, #tpu.memory_space<vmem>>, vector<128x320xbf16>
    %c18 = arith.constant 18 : index
    %c0_78 = arith.constant 0 : index
    %155 = vector.load %arg5[%c18, %c0_78] : memref<21x320xf32, #tpu.memory_space<vmem>>, vector<1x320xf32>
    %156 = arith.truncf %153 : vector<8x128xf32> to vector<8x128xbf16>
    %cst_79 = arith.constant dense<0.000000e+00> : vector<8x320xf32>
    %157 = tpu.matmul %156, %154, %cst_79 {dimension_numbers = #tpu.dot_dimension_numbers<[1], [0], [0], [1], [0, 0, 1, 1], [], []>} : vector<8x128xbf16>, vector<128x320xbf16>, vector<8x320xf32> -> vector<8x320xf32>
    %158 = vector.broadcast %155 : vector<1x320xf32> to vector<8x320xf32>
    %159 = arith.addf %157, %158 : vector<8x320xf32>
    %cst_80 = arith.constant 0.000000e+00 : f32
    %160 = vector.broadcast %cst_80 : f32 to vector<8x320xf32>
    %161 = arith.maximumf %159, %160 : vector<8x320xf32>
    %c2176 = arith.constant 2176 : index
    %c0_81 = arith.constant 0 : index
    %162 = vector.load %arg4[%c2176, %c0_81] : memref<2816x320xbf16, #tpu.memory_space<vmem>>, vector<320x320xbf16>
    %c19 = arith.constant 19 : index
    %c0_82 = arith.constant 0 : index
    %163 = vector.load %arg5[%c19, %c0_82] : memref<21x320xf32, #tpu.memory_space<vmem>>, vector<1x320xf32>
    %164 = arith.truncf %161 : vector<8x320xf32> to vector<8x320xbf16>
    %cst_83 = arith.constant dense<0.000000e+00> : vector<8x320xf32>
    %165 = tpu.matmul %164, %162, %cst_83 {dimension_numbers = #tpu.dot_dimension_numbers<[1], [0], [0], [1], [0, 0, 1, 1], [], []>} : vector<8x320xbf16>, vector<320x320xbf16>, vector<8x320xf32> -> vector<8x320xf32>
    %166 = vector.broadcast %163 : vector<1x320xf32> to vector<8x320xf32>
    %167 = arith.addf %165, %166 : vector<8x320xf32>
    %cst_84 = arith.constant 0.000000e+00 : f32
    %168 = vector.broadcast %cst_84 : f32 to vector<8x320xf32>
    %169 = arith.maximumf %167, %168 : vector<8x320xf32>
    %c2496 = arith.constant 2496 : index
    %c0_85 = arith.constant 0 : index
    %170 = vector.load %arg4[%c2496, %c0_85] : memref<2816x320xbf16, #tpu.memory_space<vmem>>, vector<320x10xbf16>
    %c20 = arith.constant 20 : index
    %c0_86 = arith.constant 0 : index
    %171 = vector.load %arg5[%c20, %c0_86] : memref<21x320xf32, #tpu.memory_space<vmem>>, vector<1x10xf32>
    %172 = arith.truncf %169 : vector<8x320xf32> to vector<8x320xbf16>
    %cst_87 = arith.constant dense<0.000000e+00> : vector<8x10xf32>
    %173 = tpu.matmul %172, %170, %cst_87 {dimension_numbers = #tpu.dot_dimension_numbers<[1], [0], [0], [1], [0, 0, 1, 1], [], []>} : vector<8x320xbf16>, vector<320x10xbf16>, vector<8x10xf32> -> vector<8x10xf32>
    %174 = vector.broadcast %171 : vector<1x10xf32> to vector<8x10xf32>
    %175 = arith.addf %173, %174 : vector<8x10xf32>
    %176 = tpu.iota {dimensions = array<i32: 1>} : vector<8x10xi32>
    %c4_i32 = arith.constant 4 : i32
    %177 = vector.broadcast %c4_i32 : i32 to vector<8x10xi32>
    %178 = arith.cmpi slt, %176, %177 : vector<8x10xi32>
    %179 = arith.negf %175 : vector<8x10xf32>
    %180 = math.exp %179 : vector<8x10xf32>
    %cst_88 = arith.constant 1.000000e+00 : f32
    %181 = vector.broadcast %cst_88 : f32 to vector<8x10xf32>
    %182 = arith.addf %181, %180 : vector<8x10xf32>
    %183 = arith.divf %181, %182 : vector<8x10xf32>
    %c7_i32 = arith.constant 7 : i32
    %184 = vector.broadcast %c7_i32 : i32 to vector<8x10xi32>
    %185 = arith.cmpi slt, %176, %184 : vector<8x10xi32>
    %186 = math.exp %175 : vector<8x10xf32>
    %187 = arith.select %185, %186, %175 : vector<8x10xi1>, vector<8x10xf32>
    %188 = arith.select %178, %183, %187 : vector<8x10xi1>, vector<8x10xf32>
    %c0_89 = arith.constant 0 : index
    %c0_90 = arith.constant 0 : index
    %189 = vector.load %arg6[%c0_89, %c0_90] : memref<8x10xf32, #tpu.memory_space<vmem>>, vector<8x10xf32>
    tpu.vector_store %arg6[%c0_89, %c0_90], %188 {strides = array<i32>} : memref<8x10xf32, #tpu.memory_space<vmem>>, vector<8x10xf32>,
    return
  }
  func.func @transform_0(%arg0: i32) -> (i32, i32) {
    %c0_i32 = arith.constant 0 : i32
    %c0_i32_0 = arith.constant 0 : i32
    return %arg0, %c0_i32 : i32, i32
  }
  func.func @transform_1(%arg0: i32) -> (i32, i32) {
    %c0_i32 = arith.constant 0 : i32
    %c0_i32_0 = arith.constant 0 : i32
    return %arg0, %c0_i32 : i32, i32
  }
  func.func @transform_2(%arg0: i32) -> (i32, i32) {
    %c0_i32 = arith.constant 0 : i32
    %c0_i32_0 = arith.constant 0 : i32
    return %arg0, %c0_i32 : i32, i32
  }
  func.func @transform_3(%arg0: i32) -> (i32, i32) {
    %c0_i32 = arith.constant 0 : i32
    %c0_i32_0 = arith.constant 0 : i32
    %c0_i32_1 = arith.constant 0 : i32
    return %c0_i32, %c0_i32_0 : i32, i32
  }
  func.func @transform_4(%arg0: i32) -> (i32, i32) {
    %c0_i32 = arith.constant 0 : i32
    %c0_i32_0 = arith.constant 0 : i32
    %c0_i32_1 = arith.constant 0 : i32
    return %c0_i32, %c0_i32_0 : i32, i32
  }
  func.func @transform_5(%arg0: i32) -> (i32, i32) {
    %c0_i32 = arith.constant 0 : i32
    %c0_i32_0 = arith.constant 0 : i32
    return %arg0, %c0_i32 : i32, i32
  }
}

</mosaic_0001>

<bundles_post_ra>
// kernel: tpu_custom_call.1
= control target key start
LH: loop header
LB: loop body
LE: loop exit
PB: predicated region body
PF: predicated region fallthrough
CT: control target
= control target key end

     0   :  { %s5310_s0 = inlined_call_operand.vmem [shape: f32[8,96], index: 0, kind: input, shape index: {}]   ;;  %s5311_s1 = inlined_call_operand.vmem [shape: f32[8,128], index: 1, kind: input, shape index: {}]   ;;  %s5312_s2 = inlined_call_operand.vmem [shape: f32[8,56], index: 2, kind: input, shape index: {}]   ;;  %s5313_s3 = inlined_call_operand.vmem [shape: bf16[2816,320], index: 3, kind: input, shape index: {}]   ;;  %s5314_s4 = inlined_call_operand.vmem [shape: f32[21,320], index: 4, kind: input, shape index: {}]   ;;  %s5315_s5 = inlined_call_operand.hbm [shape: f32[8,10], index: 5, kind: output, shape index: {}]  }
   0x1   :  { %v2472_v0 = vld [vmem:[%s5313_s3 + $0x78] sm:$0xf]  ;;  %v3428_v1 = vld [vmem:[%s5313_s3 + $0x80] sm:$0xf0]  ;;  %v2468_v2 = vld [vmem:[%s5313_s3 + $0x60] sm:$0xf] }
   0x2   :  { %v2473_v3 = vor.u32 %v3428_v1, %v2472_v0  ;;  %v3427_v4 = vld [vmem:[%s5313_s3 + $0x68] sm:$0xf0]  ;;  %v2464_v6 = vld [vmem:[%s5313_s3 + $0x48] sm:$0xf]  ;;  %v3426_v7 = vld [vmem:[%s5313_s3 + $0x50] sm:$0xf0] }
   0x3   :  { %v2469_v5 = vor.u32 %v3427_v4, %v2468_v2  ;;  %v2497_v8 = vld [vmem:[%s5313_s3 + $0x108] sm:$0xf]  ;;  %v3434_v9 = vld [vmem:[%s5313_s3 + $0x110] sm:$0xf0]  ;;  %v2493_v11 = vld [vmem:[%s5313_s3 + $0xf0] sm:$0xf]  ;;  %v2465_v13 = vor.u32 %v3426_v7, %v2464_v6 }
   0x4   :  { %82 = vmatpush.bf16.msra.mxu0 %v2473_v3  ;;  %v2498_v10 = vor.u32 %v3434_v9, %v2497_v8  ;;  %v3433_v12 = vld [vmem:[%s5313_s3 + $0xf8] sm:$0xf0]  ;;  %v2460_v14 = vld [vmem:[%s5313_s3 + $0x30] sm:$0xf] }
   0x5   :  { %v2494_v15 = vor.u32 %v3433_v12, %v2493_v11 }
   0x6   :  { %149 = vmatpush.bf16.msra.mxu1 %v2498_v10 }
   0x8   :  { %83 = vmatpush.bf16.msra.mxu0 %v2469_v5 }
   0x9   :  { %10 = vsyncpa [#allocation3], 0  ;;  %v3425_v16 = vld [vmem:[%s5313_s3 + $0x38] sm:$0xf0]  ;;  %v2489_v17 = vld [vmem:[%s5313_s3 + $0xd8] sm:$0xf] }
   0xa   :  { %v3432_v18 = vld [vmem:[%s5313_s3 + $0xe0] sm:$0xf0]  ;;  %v2461_v19 = vor.u32 %v3425_v16, %v2460_v14  ;;  %v2456_v20 = vld [vmem:[%s5313_s3 + $0x18] sm:$0xf]  ;;  %150 = vmatpush.bf16.msra.mxu1 %v2494_v15  ;;  %v2485_v23 = vld [vmem:[%s5313_s3 + $0xc0] sm:$0xf] }
   0xb   :  { %v2490_v21 = vor.u32 %v3432_v18, %v2489_v17  ;;  %v3424_v22 = vld [vmem:[%s5313_s3 + $0x20] sm:$0xf0]  ;;  %v3431_v24 = vld [vmem:[%s5313_s3 + $0xc8] sm:$0xf0]  ;;  %v2452_v27 = vld [vmem:[%s5313_s3] sm:$0xf] }
   0xc   :  { %84 = vmatpush.bf16.msra.mxu0 %v2465_v13  ;;  %v2457_v25 = vor.u32 %v3424_v22, %v2456_v20  ;;  %v2486_v26 = vor.u32 %v3431_v24, %v2485_v23  ;;  %v3423_v28 = vld [vmem:[%s5313_s3 + $0x8] sm:$0xf0]  ;;  %v25_v30 = vld [vmem:[%s5310_s0] sm:$0xff]  ;;  %vm76_vm0 = vcmask 785408   ;;  %v2481_v32 = vld [vmem:[%s5313_s3 + $0xa8] sm:$0xf] }
   0xd   :  { %v2453_v29 = vor.u32 %v3423_v28, %v2452_v27  ;;  %v39_v31 = vpack.c.bf16 %v25_v30, %v25_v30  ;;  %v3430_v33 = vld [vmem:[%s5313_s3 + $0xb0] sm:$0xf0]  ;;  %v2477_v35 = vld [vmem:[%s5313_s3 + $0x90] sm:$0xf]  ;;  %v3429_v36 = vld [vmem:[%s5313_s3 + $0x98] sm:$0xf0] }
   0xe   :  { %151 = vmatpush.bf16.msra.mxu1 %v2490_v21  ;;  %v2482_v34 = vor.u32 %v3430_v33, %v2481_v32  ;;  %v2478_v37 = vor.u32 %v3429_v36, %v2477_v35  ;;  %v2522_v38 = vld [vmem:[%s5313_s3 + $0x198] sm:$0xf]  ;;  %v3440_v39 = vld [vmem:[%s5313_s3 + $0x1a0] sm:$0xf0]  ;;  %v2518_v40 = vld [vmem:[%s5313_s3 + $0x180] sm:$0xf] }
   0xf   :  { %v2523_v41 = vor.u32 %v3440_v39, %v2522_v38  ;;  %v3439_v42 = vld [vmem:[%s5313_s3 + $0x188] sm:$0xf0]  ;;  %v2514_v44 = vld [vmem:[%s5313_s3 + $0x168] sm:$0xf]  ;;  %v3438_v45 = vld [vmem:[%s5313_s3 + $0x170] sm:$0xf0] }
  0x10   :  { %85 = vmatpush.bf16.msra.mxu0 %v2461_v19  ;;  %v2519_v43 = vor.u32 %v3439_v42, %v2518_v40  ;;  %v2515_v46 = vor.u32 %v3438_v45, %v2514_v44  ;;  %v2510_v47 = vld [vmem:[%s5313_s3 + $0x150] sm:$0xf]  ;;  %v3437_v48 = vld [vmem:[%s5313_s3 + $0x158] sm:$0xf0]  ;;  %v2506_v50 = vld [vmem:[%s5313_s3 + $0x138] sm:$0xf] }
  0x11   :  { %216 = vmatpush.bf16.msra.mxu2 %v2523_v41  ;;  %v2511_v49 = vor.u32 %v3437_v48, %v2510_v47  ;;  %v3436_v51 = vld [vmem:[%s5313_s3 + $0x140] sm:$0xf0]  ;;  %v2502_v53 = vld [vmem:[%s5313_s3 + $0x120] sm:$0xf]  ;;  %v3435_v54 = vld [vmem:[%s5313_s3 + $0x128] sm:$0xf0] }
  0x12   :  { %152 = vmatpush.bf16.msra.mxu1 %v2486_v26  ;;  %v2507_v52 = vor.u32 %v3436_v51, %v2506_v50  ;;  %v2630_v55 = vld [vmem:[%s5313_s3 + $0x408] sm:$0xf]  ;;  %v3466_v56 = vld [vmem:[%s5313_s3 + $0x410] sm:$0xf0]  ;;  %v2503_v57 = vor.u32 %v3435_v54, %v2502_v53  ;;  %v2626_v59 = vld [vmem:[%s5313_s3 + $0x3f0] sm:$0xf] }
  0x13   :  { %v2631_v58 = vor.u32 %v3466_v56, %v2630_v55  ;;  %v3465_v60 = vld [vmem:[%s5313_s3 + $0x3f8] sm:$0xf0]  ;;  %v38_v61 = vld [vmem:[%s5314_s4] ss:$0 sm:$0xff]  ;;  %v2622_v4 = vld [vmem:[%s5313_s3 + $0x3d8] sm:$0xf] }
  0x14   :  { %86 = vmatpush.bf16.msra.mxu0 %v2457_v25  ;;  %v2627_v63 = vor.u32 %v3465_v60, %v2626_v59  ;;  %v3464_v5 = vld [vmem:[%s5313_s3 + $0x3e0] sm:$0xf0]  ;;  %v2618_v7 = vld [vmem:[%s5313_s3 + $0x3c0] sm:$0xf]  ;;  %v3463_v8 = vld [vmem:[%s5313_s3 + $0x3c8] sm:$0xf0] }
  0x15   :  { %217 = vmatpush.bf16.msra.mxu2 %v2519_v43  ;;  %v2623_v6 = vor.u32 %v3464_v5, %v2622_v4  ;;  %v2619_v9 = vor.u32 %v3463_v8, %v2618_v7  ;;  %v2614_v10 = vld [vmem:[%s5313_s3 + $0x3a8] sm:$0xf]  ;;  %v3462_v11 = vld [vmem:[%s5313_s3 + $0x3b0] sm:$0xf0]  ;;  %v2610_v13 = vld [vmem:[%s5313_s3 + $0x390] sm:$0xf] }
  0x16   :  { %153 = vmatpush.bf16.msra.mxu1 %v2482_v34  ;;  %v2615_v12 = vor.u32 %v3462_v11, %v2614_v10  ;;  %v3461_v14 = vld [vmem:[%s5313_s3 + $0x398] sm:$0xf0]  ;;  %v2606_v16 = vld [vmem:[%s5313_s3 + $0x378] sm:$0xf]  ;;  %v3460_v17 = vld [vmem:[%s5313_s3 + $0x380] sm:$0xf0] }
  0x17   :  { %v2611_v15 = vor.u32 %v3461_v14, %v2610_v13  ;;  %v2607_v18 = vor.u32 %v3460_v17, %v2606_v16  ;;  %v2602_v19 = vld [vmem:[%s5313_s3 + $0x360] sm:$0xf]  ;;  %v3459_v20 = vld [vmem:[%s5313_s3 + $0x368] sm:$0xf0]  ;;  %v2547_v22 = vld [vmem:[%s5313_s3 + $0x228] sm:$0xf] }
  0x18   :  { %87 = vmatpush.bf16.msra.mxu0 %v2453_v29  ;;  %v2603_v21 = vor.u32 %v3459_v20, %v2602_v19  ;;  %v3446_v23 = vld [vmem:[%s5313_s3 + $0x230] sm:$0xf0]  ;;  %v2543_v24 = vld [vmem:[%s5313_s3 + $0x210] sm:$0xf]  ;;  %v3445_v26 = vld [vmem:[%s5313_s3 + $0x218] sm:$0xf0] }
  0x19   :  { %218 = vmatpush.bf16.msra.mxu2 %v2515_v46  ;;  %v2548_v25 = vor.u32 %v3446_v23, %v2547_v22  ;;  %v2544_v27 = vor.u32 %v3445_v26, %v2543_v24  ;;  %v2539_v28 = vld [vmem:[%s5313_s3 + $0x1f8] sm:$0xf]  ;;  %v3444_v29 = vld [vmem:[%s5313_s3 + $0x200] sm:$0xf0]  ;;  %v106_v30 = vld [vmem:[%s5314_s4 + $0x1] ss:$0 sm:$0xff] }
  0x1a   :  { %154 = vmatpush.bf16.msra.mxu1 %v2478_v37  ;;  %v2535_v32 = vld [vmem:[%s5313_s3 + $0x1e0] sm:$0xf]  ;;  %v3443_v33 = vld [vmem:[%s5313_s3 + $0x1e8] sm:$0xf0]  ;;  %v2531_v38 = vld [vmem:[%s5313_s3 + $0x1c8] sm:$0xf] }
  0x1b   :  { %2474 = vmatmul.msk.bf16.vlgmr.msra.gmra.mxu0 %vm76_vm0, %v39_v31  ;;  %283 = vmatpush.bf16.msra.mxu3 %v2548_v25  ;;  %v2540_v31 = vor.u32 %v3444_v29, %v2539_v28  ;;  %v2536_v36 = vor.u32 %v3443_v33, %v2535_v32  ;;  %v3442_v39 = vld [vmem:[%s5313_s3 + $0x1d0] sm:$0xf0]  ;;  %v2527_v42 = vld [vmem:[%s5313_s3 + $0x1b0] sm:$0xf]  ;;  %v3441_v43 = vld [vmem:[%s5313_s3 + $0x1b8] sm:$0xf0] }
  0x1c   :  { %v2532_v41 = vor.u32 %v3442_v39, %v2531_v38  ;;  %v2662_v45 = vld [vmem:[%s5313_s3 + $0x4c8] sm:$0xf]  ;;  %v3474_v46 = vld [vmem:[%s5313_s3 + $0x4d0] sm:$0xf0]  ;;  %v2528_v47 = vor.u32 %v3441_v43, %v2527_v42  ;;  %v3473_v50 = vld [vmem:[%s5313_s3 + $0x4b8] sm:$0xf0] }
  0x1d   :  { %219 = vmatpush.bf16.msra.mxu2 %v2511_v49  ;;  %v2663_v48 = vor.u32 %v3474_v46, %v2662_v45  ;;  %v2658_v49 = vld [vmem:[%s5313_s3 + $0x4b0] sm:$0xf]  ;;  %v2654_v54 = vld [vmem:[%s5313_s3 + $0x498] sm:$0xf]  ;;  %v3472_v55 = vld [vmem:[%s5313_s3 + $0x4a0] sm:$0xf0] }
  0x1e   :  { %v2659_v51 = vor.u32 %v3473_v50, %v2658_v49  ;;  %v2655_v56 = vor.u32 %v3472_v55, %v2654_v54  ;;  %v2646_v60 = vld [vmem:[%s5313_s3 + $0x468] sm:$0xf]  ;;  %v2634_v5 = vld [vmem:[%s5313_s3 + $0x420] sm:$0xf]  ;;  %v2572_v8 = vld [vmem:[%s5313_s3 + $0x2b8] sm:$0xf] }
  0x1f   :  { %284 = vmatpush.bf16.msra.mxu3 %v2544_v27  ;;  %v2568_v10 = vld [vmem:[%s5313_s3 + $0x2a0] sm:$0xf]  ;;  %v2564_v14 = vld [vmem:[%s5313_s3 + $0x288] sm:$0xf]  ;;  %v2560_v19 = vld [vmem:[%s5313_s3 + $0x270] sm:$0xf] }
  0x20   :  { %v173_v16 = vld [vmem:[%s5314_s4 + $0x2] ss:$0 sm:$0xff]  ;;  %v3449_v20 = vld [vmem:[%s5313_s3 + $0x278] sm:$0xf0]  ;;  %v2556_v24 = vld [vmem:[%s5313_s3 + $0x258] sm:$0xf] }
  0x21   :  { %220 = vmatpush.bf16.msra.mxu2 %v2507_v52  ;;  %v428_v52 = vld [vmem:[%s5311_s1] sm:$0xff]  ;;  %v2561_v23 = vor.u32 %v3449_v20, %v2560_v19  ;;  %v3482_v32 = vld [vmem:[%s5313_s3 + $0x590] sm:$0xf0]  ;;  %v2678_v50 = vld [vmem:[%s5313_s3 + $0x528] sm:$0xf]  ;;  %vm942_vm1 = vcmask 1043456  }
  0x22   :  { %v446_v53 = vpack.c.bf16 %v428_v52, %v428_v52  ;;  %v3448_v25 = vld [vmem:[%s5313_s3 + $0x260] sm:$0xf0]  ;;  %v2552_v29 = vld [vmem:[%s5313_s3 + $0x240] sm:$0xf]  ;;  %v3477_v54 = vld [vmem:[%s5313_s3 + $0x518] sm:$0xf0] }
  0x23   :  { %285 = vmatpush.bf16.msra.mxu3 %v2540_v31  ;;  %v2557_v27 = vor.u32 %v3448_v25, %v2556_v24  ;;  %v2694_v31 = vld [vmem:[%s5313_s3 + $0x588] sm:$0xf]  ;;  %v3480_v45 = vld [vmem:[%s5313_s3 + $0x560] sm:$0xf0]  ;;  %v2589_v19 = vld [vmem:[%s5313_s3 + $0x318] sm:$0xf] }
  0x24   :  { %v3456_v20 = vld [vmem:[%s5313_s3 + $0x320] sm:$0xf0]  ;;  %vm938_vm3 = vcmask 457728   ;;  %vm2075_vm12 = vcmask 523264   ;;  %s2441_s9 = sshll.u32 %s5315_s5, 4  ;;  %s2442_s9 = int_to_ptr.hbm [resolvable:$true] %s2441_s9 }
  0x25   :  { %221 = vmatpush.bf16.msra.mxu2 %v2503_v57  ;;  %v2650_v57 = vld [vmem:[%s5313_s3 + $0x480] sm:$0xf]  ;;  %v525_v24 = vld [vmem:[%s5314_s4 + $0x7] ss:$0 sm:$0xff]  ;;  %v2590_v25 = vor.u32 %v3456_v20, %v2589_v19  ;;  %v2827_v19 = vld [vmem:[%s5313_s3 + $0x8b8] sm:$0xf] }
  0x26   :  { %v3515_v20 = vld [vmem:[%s5313_s3 + $0x8c0] sm:$0xf0] }
  0x27   :  { %286 = vmatpush.bf16.msra.mxu3 %v2536_v36  ;;  %v3481_v36 = vld [vmem:[%s5313_s3 + $0x578] sm:$0xf0] }
  0x29   :  { %495 = vmatpush.bf16.msrb.mxu2 %v2631_v58  ;;  %v3471_v58 = vld [vmem:[%s5313_s3 + $0x488] sm:$0xf0] }
  0x2a   :  { %v2651_v59 = vor.u32 %v3471_v58, %v2650_v57  ;;  %v3476_v57 = vld [vmem:[%s5313_s3 + $0x500] sm:$0xf0] }
  0x2b   :  { %287 = vmatpush.bf16.msra.mxu3 %v2532_v41 }
  0x2d   :  { %496 = vmatpush.bf16.msrb.mxu2 %v2627_v63  ;;  %v2642_v63 = vld [vmem:[%s5313_s3 + $0x450] sm:$0xf] }
  0x2f   :  { %288 = vmatpush.bf16.msra.mxu3 %v2528_v47  ;;  %v2682_v47 = vld [vmem:[%s5313_s3 + $0x540] sm:$0xf] }
  0x31   :  { %497 = vmatpush.bf16.msrb.mxu2 %v2623_v6  ;;  %v3467_v6 = vld [vmem:[%s5313_s3 + $0x428] sm:$0xf0] }
  0x32   :  { %v2635_v7 = vor.u32 %v3467_v6, %v2634_v5 }
  0x33   :  { %575 = vmatpush.bf16.msrb.mxu3 %v2663_v48  ;;  %v3479_v48 = vld [vmem:[%s5313_s3 + $0x548] sm:$0xf0] }
  0x34   :  { %v2683_v49 = vor.u32 %v3479_v48, %v2682_v47 }
  0x35   :  { %498 = vmatpush.bf16.msrb.mxu2 %v2619_v9  ;;  %v3452_v9 = vld [vmem:[%s5313_s3 + $0x2c0] sm:$0xf0] }
  0x36   :  { %v2573_v11 = vor.u32 %v3452_v9, %v2572_v8  ;;  %v3509_v8 = vld [vmem:[%s5313_s3 + $0x818] sm:$0xf0]  ;;  %v2597_v9 = vld [vmem:[%s5313_s3 + $0x348] sm:$0xf] }
  0x37   :  { %576 = vmatpush.bf16.msrb.mxu3 %v2659_v51  ;;  %v3478_v51 = vld [vmem:[%s5313_s3 + $0x530] sm:$0xf0] }
  0x38   :  { %350 = vmatpush.bf16.msrb.mxu0 %v2573_v11  ;;  %v2679_v52 = vor.u32 %v3478_v51, %v2678_v50  ;;  %v2593_v11 = vld [vmem:[%s5313_s3 + $0x330] sm:$0xf]  ;;  %v3488_v50 = vld [vmem:[%s5313_s3 + $0x620] sm:$0xf0] }
  0x39   :  { %499 = vmatpush.bf16.msrb.mxu2 %v2615_v12  ;;  %v3451_v12 = vld [vmem:[%s5313_s3 + $0x2a8] sm:$0xf0] }
  0x3a   :  { %v2569_v13 = vor.u32 %v3451_v12, %v2568_v10  ;;  %v3458_v10 = vld [vmem:[%s5313_s3 + $0x350] sm:$0xf0] }
  0x3b   :  { %577 = vmatpush.bf16.msrb.mxu3 %v2655_v56  ;;  %v2670_v56 = vld [vmem:[%s5313_s3 + $0x4f8] sm:$0xf] }
  0x3c   :  { %351 = vmatpush.bf16.msrb.mxu0 %v2569_v13  ;;  %v2671_v58 = vor.u32 %v3476_v57, %v2670_v56  ;;  %v2710_v56 = vld [vmem:[%s5313_s3 + $0x5e8] sm:$0xf]  ;;  %v3486_v57 = vld [vmem:[%s5313_s3 + $0x5f0] sm:$0xf0] }
  0x3d   :  { %500 = vmatpush.bf16.msrb.mxu2 %v2611_v15  ;;  %v3450_v15 = vld [vmem:[%s5313_s3 + $0x290] sm:$0xf0] }
  0x3e   :  { %v2565_v17 = vor.u32 %v3450_v15, %v2564_v14  ;;  %v2598_v14 = vor.u32 %v3458_v10, %v2597_v9  ;;  %v3457_v15 = vld [vmem:[%s5313_s3 + $0x338] sm:$0xf0] }
  0x3f   :  { %578 = vmatpush.bf16.msrb.mxu3 %v2651_v59  ;;  %v2666_v59 = vld [vmem:[%s5313_s3 + $0x4e0] sm:$0xf] }
  0x40   :  { %352 = vmatpush.bf16.msrb.mxu0 %v2565_v17  ;;  %v3508_v17 = vld [vmem:[%s5313_s3 + $0x800] sm:$0xf0]  ;;  %417 = vmatpush.bf16.msrb.mxu1 %v2598_v14 }
  0x41   :  { %501 = vmatpush.bf16.msrb.mxu2 %v2607_v18 }
  0x44   :  { %353 = vmatpush.bf16.msrb.mxu0 %v2561_v23  ;;  %v3507_v23 = vld [vmem:[%s5313_s3 + $0x7e8] sm:$0xf0] }
  0x45   :  { %502 = vmatpush.bf16.msrb.mxu2 %v2603_v21 }
  0x48   :  { %354 = vmatpush.bf16.msrb.mxu0 %v2557_v27  ;;  %v3455_v27 = vld [vmem:[%s5313_s3 + $0x308] sm:$0xf0] }
  0x98   :  { %v89_v62 = vpop.f32.mrf.mxu0 }
  0x99   :  { %v90_v0 = vadd.f32 %v89_v62, %v38_v61  ;;  %v3470_v61 = vld [vmem:[%s5313_s3 + $0x470] sm:$0xf0] }
  0x9a   :  { %v2647_v62 = vor.u32 %v3470_v61, %v2646_v60  ;;  %v3475_v60 = vld [vmem:[%s5313_s3 + $0x4e8] sm:$0xf0] }
  0x9b   :  { %v93_v1 = vmax.f32 %v90_v0, 0.0  ;;  %v3469_v0 = vld [vmem:[%s5313_s3 + $0x458] sm:$0xf0]  ;;  %v2667_v61 = vor.u32 %v3475_v60, %v2666_v59  ;;  %v2706_v59 = vld [vmem:[%s5313_s3 + $0x5d0] sm:$0xf] }
  0x9c   :  { %579 = vmatpush.bf16.msrb.mxu3 %v2647_v62  ;;  %v914_v62 = vld [vmem:[%s5313_s3 + $0x828] sm:$0xf]  ;;  %v3485_v60 = vld [vmem:[%s5313_s3 + $0x5d8] sm:$0xf0] }
  0x9d   :  { %v107_v2 = vpack.c.bf16 %v93_v1, %v93_v1  ;;  %v2643_v1 = vor.u32 %v3469_v0, %v2642_v63  ;;  %v930_v63 = vunpack.c.l.b16 %v914_v62  ;;  %v240_v0 = vld [vmem:[%s5314_s4 + $0x3] ss:$0 sm:$0xff]  ;;  %v2702_v62 = vld [vmem:[%s5313_s3 + $0x5b8] sm:$0xf] }
  0x9f   :  { %2499 = vmatmul.msk.bf16.vlgmr.msra.gmra.mxu1 %vm76_vm0, %v107_v2  ;;  %v2638_v2 = vld [vmem:[%s5313_s3 + $0x438] sm:$0xf] }
  0xa0   :  { %v91_v3 = vpop.f32.mrf.mxu0  ;;  %580 = vmatpush.bf16.msrb.mxu3 %v2643_v1 }
  0xa1   :  { %v3468_v3 = vld [vmem:[%s5313_s3 + $0x440] sm:$0xf0] }
  0xa2   :  { %v2639_v4 = vor.u32 %v3468_v3, %v2638_v2  ;;  %v934_v3 = vpack.c.b16 %v930_v63, %v930_v63  ;;  %v3484_v63 = vld [vmem:[%s5313_s3 + $0x5c0] sm:$0xf0] }
  0xa4   :  { %581 = vmatpush.bf16.msrb.mxu3 %v2639_v4  ;;  %v944_v6 = vsel %vm942_vm1, %v934_v3, 0 }
  0xa8   :  { %582 = vmatpush.bf16.msrb.mxu3 %v2635_v7  ;;  %v2802_v7 = vld [vmem:[%s5313_s3 + $0x810] sm:$0xf] }
  0xa9   :  { %v2803_v13 = vor.u32 %v3509_v8, %v2802_v7  ;;  %v2835_v7 = vld [vmem:[%s5313_s3 + $0x8e8] sm:$0xf]  ;;  %v3517_v8 = vld [vmem:[%s5313_s3 + $0x8f0] sm:$0xf0] }
  0xaa   :  { %v2836_v10 = vor.u32 %v3517_v8, %v2835_v7  ;;  %v3525_v7 = vld [vmem:[%s5313_s3 + $0x9b0] sm:$0xf0] }
 0x11c   :  { %v156_v34 = vpop.f32.mrf.mxu1 }
 0x11d   :  { %v157_v35 = vadd.f32 %v156_v34, %v106_v30  ;;  %v3447_v30 = vld [vmem:[%s5313_s3 + $0x248] sm:$0xf0]  ;;  %v2695_v34 = vor.u32 %v3482_v32, %v2694_v31 }
 0x11e   :  { %v2553_v33 = vor.u32 %v3447_v30, %v2552_v29 }
 0x11f   :  { %v160_v37 = vmax.f32 %v157_v35, 0.0  ;;  %v2690_v35 = vld [vmem:[%s5313_s3 + $0x570] sm:$0xf] }
 0x120   :  { %355 = vmatpush.bf16.msrb.mxu0 %v2553_v33  ;;  %v2691_v39 = vor.u32 %v3481_v36, %v2690_v35  ;;  %v2581_v33 = vld [vmem:[%s5313_s3 + $0x2e8] sm:$0xf] }
 0x121   :  { %v174_v40 = vpack.c.bf16 %v160_v37, %v160_v37  ;;  %v445_v37 = vld [vmem:[%s5314_s4 + $0x6] ss:$0 sm:$0xff] }
 0x123   :  { %2524 = vmatmul.msk.bf16.vlgmr.msra.gmra.mxu2 %vm76_vm0, %v174_v40 }
 0x124   :  { %v158_v44 = vpop.f32.mrf.mxu1  ;;  %655 = vmatpush.bf16.msra.mxu0 %v2695_v34  ;;  %v3454_v34 = vld [vmem:[%s5313_s3 + $0x2f0] sm:$0xf0] }
 0x125   :  { %v2686_v44 = vld [vmem:[%s5313_s3 + $0x558] sm:$0xf]  ;;  %v2582_v36 = vor.u32 %v3454_v34, %v2581_v33  ;;  %v2746_v33 = vld [vmem:[%s5313_s3 + $0x6c0] sm:$0xf]  ;;  %v3495_v34 = vld [vmem:[%s5313_s3 + $0x6c8] sm:$0xf0] }
 0x126   :  { %v2687_v46 = vor.u32 %v3480_v45, %v2686_v44  ;;  %v2722_v45 = vld [vmem:[%s5313_s3 + $0x630] sm:$0xf] }
 0x128   :  { %656 = vmatpush.bf16.msra.mxu0 %v2691_v39 }
 0x12c   :  { %657 = vmatpush.bf16.msra.mxu0 %v2687_v46  ;;  %v3489_v46 = vld [vmem:[%s5313_s3 + $0x638] sm:$0xf0] }
 0x12d   :  { %v2723_v47 = vor.u32 %v3489_v46, %v2722_v45  ;;  %v3512_v45 = vld [vmem:[%s5313_s3 + $0x878] sm:$0xf0] }
 0x130   :  { %658 = vmatpush.bf16.msra.mxu0 %v2683_v49  ;;  %v2718_v49 = vld [vmem:[%s5313_s3 + $0x618] sm:$0xf] }
 0x133   :  { %503 = vmatmul.bf16.vlgmr.msrb.gmra.mxu2 %v446_v53  ;;  %v2674_v53 = vld [vmem:[%s5313_s3 + $0x510] sm:$0xf] }
 0x134   :  { %659 = vmatpush.bf16.msra.mxu0 %v2679_v52  ;;  %v2675_v55 = vor.u32 %v3477_v54, %v2674_v53  ;;  %v2719_v52 = vor.u32 %v3488_v50, %v2718_v49  ;;  %v2714_v53 = vld [vmem:[%s5313_s3 + $0x600] sm:$0xf]  ;;  %v3487_v54 = vld [vmem:[%s5313_s3 + $0x608] sm:$0xf0]  ;;  %v2738_v49 = vld [vmem:[%s5313_s3 + $0x690] sm:$0xf] }
 0x135   :  { %v3493_v50 = vld [vmem:[%s5313_s3 + $0x698] sm:$0xf0] }
 0x138   :  { %660 = vmatpush.bf16.msra.mxu0 %v2675_v55  ;;  %v2715_v55 = vor.u32 %v3487_v54, %v2714_v53  ;;  %v2739_v53 = vor.u32 %v3493_v50, %v2738_v49  ;;  %v3502_v49 = vld [vmem:[%s5313_s3 + $0x770] sm:$0xf0] }
 0x13c   :  { %661 = vmatpush.bf16.msra.mxu0 %v2671_v58  ;;  %v2711_v58 = vor.u32 %v3486_v57, %v2710_v56  ;;  %v3510_v56 = vld [vmem:[%s5313_s3 + $0x848] sm:$0xf0]  ;;  %v915_v57 = vld [vmem:[%s5314_s4 + $0x1c] ss:$0 sm:$0xff] }
 0x140   :  { %662 = vmatpush.bf16.msra.mxu0 %v2667_v61  ;;  %v2707_v61 = vor.u32 %v3485_v60, %v2706_v59 }
 0x1a6   :  { %v223_v18 = vpop.f32.mrf.mxu2 }
 0x1a7   :  { %v224_v21 = vadd.f32 %v223_v18, %v173_v16  ;;  %v2798_v16 = vld [vmem:[%s5313_s3 + $0x7f8] sm:$0xf]  ;;  %v2594_v18 = vor.u32 %v3457_v15, %v2593_v11 }
 0x1a9   :  { %v227_v22 = vmax.f32 %v224_v21, 0.0  ;;  %v2799_v21 = vor.u32 %v3508_v17, %v2798_v16  ;;  %418 = vmatpush.bf16.msrb.mxu1 %v2594_v18  ;;  %v2758_v16 = vld [vmem:[%s5313_s3 + $0x708] sm:$0xf]  ;;  %v3498_v17 = vld [vmem:[%s5313_s3 + $0x710] sm:$0xf0] }
 0x1aa   :  { %v2754_v18 = vld [vmem:[%s5313_s3 + $0x6f0] sm:$0xf] }
 0x1ab   :  { %v241_v26 = vpack.c.bf16 %v227_v22, %v227_v22  ;;  %v2794_v22 = vld [vmem:[%s5313_s3 + $0x7e0] sm:$0xf] }
 0x1ac   :  { %v2795_v29 = vor.u32 %v3507_v23, %v2794_v22  ;;  %v3497_v22 = vld [vmem:[%s5313_s3 + $0x6f8] sm:$0xf0] }
 0x1ad   :  { %2549 = vmatmul.msk.bf16.vlgmr.msra.gmra.mxu3 %vm76_vm0, %v241_v26  ;;  %v2585_v26 = vld [vmem:[%s5313_s3 + $0x300] sm:$0xf]  ;;  %419 = vmatpush.bf16.msrb.mxu1 %v2590_v25  ;;  %v2755_v23 = vor.u32 %v3497_v22, %v2754_v18  ;;  %v2750_v25 = vld [vmem:[%s5313_s3 + $0x6d8] sm:$0xf]  ;;  %v2851_v18 = vld [vmem:[%s5313_s3 + $0x948] sm:$0xf] }
 0x1ae   :  { %v225_v28 = vpop.f32.mrf.mxu2  ;;  %v2586_v31 = vor.u32 %v3455_v27, %v2585_v26  ;;  %v3496_v26 = vld [vmem:[%s5313_s3 + $0x6e0] sm:$0xf0]  ;;  %v2823_v27 = vld [vmem:[%s5313_s3 + $0x8a0] sm:$0xf]  ;;  %v3520_v22 = vld [vmem:[%s5313_s3 + $0x938] sm:$0xf0] }
 0x1b1   :  { %420 = vmatpush.bf16.msrb.mxu1 %v2586_v31 }
 0x1b5   :  { %421 = vmatpush.bf16.msrb.mxu1 %v2582_v36  ;;  %v2819_v36 = vld [vmem:[%s5313_s3 + $0x888] sm:$0xf] }
 0x1b6   :  { %v504_v38 = vpop.f32.mrf.mxu2 }
 0x1b7   :  { %v505_v40 = vadd.f32 %v504_v38, %v445_v37  ;;  %v2577_v37 = vld [vmem:[%s5313_s3 + $0x2d0] sm:$0xf]  ;;  %v3453_v38 = vld [vmem:[%s5313_s3 + $0x2d8] sm:$0xf0] }
 0x1b9   :  { %v508_v41 = vmax.f32 %v505_v40, 0.0  ;;  %v2726_v40 = vld [vmem:[%s5313_s3 + $0x648] sm:$0xf] }
 0x1bb   :  { %v526_v42 = vpack.c.bf16 %v508_v41, %v508_v41  ;;  %v3490_v41 = vld [vmem:[%s5313_s3 + $0x650] sm:$0xf0] }
 0x1bc   :  { %v2727_v44 = vor.u32 %v3490_v41, %v2726_v40  ;;  %v2742_v41 = vld [vmem:[%s5313_s3 + $0x6a8] sm:$0xf] }
 0x1bd   :  { %583 = vmatmul.bf16.vlgmr.msrb.gmra.mxu3 %v526_v42  ;;  %v22_v42 = vld [vmem:[%s5312_s2] sm:$0xff] }
 0x1be   :  { %v506_v43 = vpop.f32.mrf.mxu2  ;;  %vm23_vm2 = vcmp.ne.f32.partialorder %v22_v42, %v22_v42 }
 0x1bf   :  { %v2578_v43 = vor.u32 %v3453_v38, %v2577_v37  ;;  %v24_v48 = vsel %vm23_vm2, 0.0, %v22_v42  ;;  %v3513_v37 = vld [vmem:[%s5313_s3 + $0x890] sm:$0xf0] }
 0x1c0   :  { %v916_v51 = vpack.c.bf16 %v24_v48, %v24_v48  ;;  %v2820_v40 = vor.u32 %v3513_v37, %v2819_v36  ;;  %v3494_v42 = vld [vmem:[%s5313_s3 + $0x6b0] sm:$0xf0]  ;;  %v3505_v36 = vld [vmem:[%s5313_s3 + $0x7b8] sm:$0xf0] }
 0x1c1   :  { %422 = vmatpush.bf16.msrb.mxu1 %v2578_v43  ;;  %v2743_v46 = vor.u32 %v3494_v42, %v2742_v41 }
 0x1c5   :  { %735 = vmatpush.bf16.msra.mxu1 %v2727_v44  ;;  %v2815_v44 = vld [vmem:[%s5313_s3 + $0x870] sm:$0xf] }
 0x1c6   :  { %v2816_v48 = vor.u32 %v3512_v45, %v2815_v44  ;;  %v3503_v44 = vld [vmem:[%s5313_s3 + $0x788] sm:$0xf0] }
 0x1c9   :  { %736 = vmatpush.bf16.msra.mxu1 %v2723_v47 }
 0x1cd   :  { %737 = vmatpush.bf16.msra.mxu1 %v2719_v52  ;;  %v3511_v52 = vld [vmem:[%s5313_s3 + $0x860] sm:$0xf0] }
 0x1d1   :  { %738 = vmatpush.bf16.msra.mxu1 %v2715_v55  ;;  %v2807_v55 = vld [vmem:[%s5313_s3 + $0x840] sm:$0xf] }
 0x1d2   :  { %v2808_v59 = vor.u32 %v3510_v56, %v2807_v55  ;;  %v2766_v56 = vld [vmem:[%s5313_s3 + $0x738] sm:$0xf] }
 0x1d5   :  { %739 = vmatpush.bf16.msra.mxu1 %v2711_v58 }
 0x1d9   :  { %740 = vmatpush.bf16.msra.mxu1 %v2707_v61 }
 0x230   :  { %v290_v1 = vpop.f32.mrf.mxu3 }
 0x231   :  { %v291_v2 = vadd.f32 %v290_v1, %v240_v0  ;;  %v2703_v0 = vor.u32 %v3484_v63, %v2702_v62  ;;  %v2698_v1 = vld [vmem:[%s5313_s3 + $0x5a0] sm:$0xf] }
 0x233   :  { %v294_v4 = vmax.f32 %v291_v2, 0.0  ;;  %741 = vmatpush.bf16.msra.mxu1 %v2703_v0  ;;  %v3483_v2 = vld [vmem:[%s5313_s3 + $0x5a8] sm:$0xf0]  ;;  %v2734_v0 = vld [vmem:[%s5313_s3 + $0x678] sm:$0xf] }
 0x234   :  { %v2699_v3 = vor.u32 %v3483_v2, %v2698_v1  ;;  %v3492_v1 = vld [vmem:[%s5313_s3 + $0x680] sm:$0xf0] }
 0x235   :  { %v308_v5 = vpack.c.bf16 %v294_v4, %v294_v4  ;;  %v307_v4 = vld [vmem:[%s5314_s4 + $0x4] ss:$0 sm:$0xff]  ;;  %v2735_v2 = vor.u32 %v3492_v1, %v2734_v0  ;;  %v2899_v0 = vld [vmem:[%s5313_s3 + $0xa68] sm:$0xf]  ;;  %v3533_v1 = vld [vmem:[%s5313_s3 + $0xa70] sm:$0xf0] }
 0x237   :  { %2574 = vmatmul.msk.bf16.vlgmr.msrb.gmra.mxu0 %vm76_vm0, %v308_v5  ;;  %742 = vmatpush.bf16.msra.mxu1 %v2699_v3  ;;  %v2730_v3 = vld [vmem:[%s5313_s3 + $0x660] sm:$0xf] }
 0x238   :  { %v292_v12 = vpop.f32.mrf.mxu3  ;;  %950 = vmatpush.bf16.msrb.mxu0 %v944_v6 }
 0x239   :  { %v2831_v12 = vld [vmem:[%s5313_s3 + $0x8d0] sm:$0xf] }
 0x23c   :  { %951 = vmatpush.bf16.msrb.mxu0 %v2803_v13  ;;  %v3516_v13 = vld [vmem:[%s5313_s3 + $0x8d8] sm:$0xf0] }
 0x23d   :  { %v2832_v15 = vor.u32 %v3516_v13, %v2831_v12  ;;  %v2859_v12 = vld [vmem:[%s5313_s3 + $0x978] sm:$0xf]  ;;  %v3523_v13 = vld [vmem:[%s5313_s3 + $0x980] sm:$0xf0] }
 0x240   :  { %v584_v28 = vpop.f32.mrf.mxu3  ;;  %952 = vmatpush.bf16.msrb.mxu0 %v2799_v21  ;;  %v2759_v21 = vor.u32 %v3498_v17, %v2758_v16  ;;  %v3522_v16 = vld [vmem:[%s5313_s3 + $0x968] sm:$0xf0] }
 0x241   :  { %v585_v30 = vadd.f32 %v584_v28, %v525_v24  ;;  %v2828_v24 = vor.u32 %v3515_v20, %v2827_v19  ;;  %v3514_v28 = vld [vmem:[%s5313_s3 + $0x8a8] sm:$0xf0]  ;;  %v3521_v19 = vld [vmem:[%s5313_s3 + $0x950] sm:$0xf0] }
 0x242   :  { %815 = vmatpush.bf16.msra.mxu2 %v2759_v21  ;;  %v2852_v20 = vor.u32 %v3521_v19, %v2851_v18  ;;  %v2847_v21 = vld [vmem:[%s5313_s3 + $0x930] sm:$0xf] }
 0x243   :  { %v588_v32 = vmax.f32 %v585_v30, 0.0  ;;  %v2751_v30 = vor.u32 %v3496_v26, %v2750_v25  ;;  %v3519_v25 = vld [vmem:[%s5313_s3 + $0x920] sm:$0xf0]  ;;  %v2879_v19 = vld [vmem:[%s5313_s3 + $0x9f0] sm:$0xf] }
 0x244   :  { %953 = vmatpush.bf16.msrb.mxu0 %v2795_v29  ;;  %v605_v29 = vld [vmem:[%s5314_s4 + $0x18] ss:$0 sm:$0xff] }
 0x245   :  { %v606_v35 = vpack.c.bf16 %v588_v32, %v588_v32  ;;  %v2824_v32 = vor.u32 %v3514_v28, %v2823_v27  ;;  %v2839_v28 = vld [vmem:[%s5313_s3 + $0x900] sm:$0xf] }
 0x246   :  { %816 = vmatpush.bf16.msra.mxu2 %v2755_v23  ;;  %v2848_v23 = vor.u32 %v3520_v22, %v2847_v21  ;;  %v2875_v22 = vld [vmem:[%s5313_s3 + $0x9d8] sm:$0xf] }
 0x247   :  { %663 = vmatmul.bf16.vlgmr.msra.gmra.mxu0 %v606_v35 }
 0x248   :  { %v586_v39 = vpop.f32.mrf.mxu3 }
 0x249   :  { %v2747_v39 = vor.u32 %v3495_v34, %v2746_v33  ;;  %v3506_v33 = vld [vmem:[%s5313_s3 + $0x7d0] sm:$0xf0]  ;;  %v2786_v34 = vld [vmem:[%s5313_s3 + $0x7b0] sm:$0xf] }
 0x24a   :  { %817 = vmatpush.bf16.msra.mxu2 %v2751_v30  ;;  %v2787_v37 = vor.u32 %v3505_v36, %v2786_v34 }
 0x24e   :  { %818 = vmatpush.bf16.msra.mxu2 %v2747_v39  ;;  %v3504_v39 = vld [vmem:[%s5313_s3 + $0x7a0] sm:$0xf0] }
 0x252   :  { %819 = vmatpush.bf16.msra.mxu2 %v2743_v46 }
 0x256   :  { %820 = vmatpush.bf16.msra.mxu2 %v2739_v53  ;;  %v2770_v53 = vld [vmem:[%s5313_s3 + $0x750] sm:$0xf] }
 0x257   :  { %2804 = vmatmul.msk.bf16.vlgmr.msrb.gmra.mxu0 %vm938_vm3, %v916_v51  ;;  %v2811_v51 = vld [vmem:[%s5313_s3 + $0x858] sm:$0xf]  ;;  %vm2432_vm3 = vcmask 80896  }
 0x258   :  { %v2812_v54 = vor.u32 %v3511_v52, %v2811_v51 }
 0x25a   :  { %821 = vmatpush.bf16.msra.mxu2 %v2735_v2 }
 0x2b4   :  { %v357_v5 = vpop.f32.mrf.mxu0 }
 0x2b5   :  { %v358_v6 = vadd.f32 %v357_v5, %v307_v4  ;;  %v3491_v4 = vld [vmem:[%s5313_s3 + $0x668] sm:$0xf0] }
 0x2b6   :  { %v2731_v5 = vor.u32 %v3491_v4, %v2730_v3  ;;  %v2900_v4 = vor.u32 %v3533_v1, %v2899_v0  ;;  %v2992_v1 = vld [vmem:[%s5313_s3 + $0xbe8] sm:$0xf] }
 0x2b7   :  { %v361_v9 = vmax.f32 %v358_v6, 0.0  ;;  %v2867_v6 = vld [vmem:[%s5313_s3 + $0x9a8] sm:$0xf] }
 0x2b8   :  { %v2868_v8 = vor.u32 %v3525_v7, %v2867_v6  ;;  %822 = vmatpush.bf16.msra.mxu2 %v2731_v5  ;;  %v2895_v6 = vld [vmem:[%s5313_s3 + $0xa50] sm:$0xf]  ;;  %v3532_v7 = vld [vmem:[%s5313_s3 + $0xa58] sm:$0xf0] }
 0x2b9   :  { %v375_v11 = vpack.c.bf16 %v361_v9, %v361_v9  ;;  %v2863_v9 = vld [vmem:[%s5313_s3 + $0x990] sm:$0xf] }
 0x2bb   :  { %2599 = vmatmul.msk.bf16.vlgmr.msrb.gmra.mxu1 %vm76_vm0, %v375_v11 }
 0x2bc   :  { %v359_v14 = vpop.f32.mrf.mxu0  ;;  %1026 = vmatpush.bf16.msrb.mxu1 %v2836_v10  ;;  %1106 = vmatpush.bf16.msrb.mxu2 %v2868_v8  ;;  %v3524_v10 = vld [vmem:[%s5313_s3 + $0x998] sm:$0xf0] }
 0x2bd   :  { %v2864_v11 = vor.u32 %v3524_v10, %v2863_v9  ;;  %v2860_v14 = vor.u32 %v3523_v13, %v2859_v12  ;;  %v2896_v9 = vor.u32 %v3532_v7, %v2895_v6  ;;  %v2891_v10 = vld [vmem:[%s5313_s3 + $0xa38] sm:$0xf]  ;;  %v2887_v13 = vld [vmem:[%s5313_s3 + $0xa20] sm:$0xf]  ;;  %v2984_v6 = vld [vmem:[%s5313_s3 + $0xbd0] sm:$0xf] }
 0x2be   :  { %v3555_v7 = vld [vmem:[%s5313_s3 + $0xbd8] sm:$0xf0] }
 0x2c0   :  { %1027 = vmatpush.bf16.msrb.mxu1 %v2832_v15  ;;  %1107 = vmatpush.bf16.msrb.mxu2 %v2864_v11  ;;  %v2855_v15 = vld [vmem:[%s5313_s3 + $0x960] sm:$0xf]  ;;  %v3531_v11 = vld [vmem:[%s5313_s3 + $0xa40] sm:$0xf0] }
 0x2c1   :  { %v2856_v17 = vor.u32 %v3522_v16, %v2855_v15  ;;  %v2892_v12 = vor.u32 %v3531_v11, %v2891_v10  ;;  %v2883_v16 = vld [vmem:[%s5313_s3 + $0xa08] sm:$0xf]  ;;  %v2986_v10 = vld [vmem:[%s5313_s3 + $0xbdc] sm:$0xf0]  ;;  %v2985_v11 = vor.u32 %v3555_v7, %v2984_v6  ;;  %v3581_v6 = vld [vmem:[%s5313_s3 + $0xcb8] sm:$0xf0] }
 0x2c4   :  { %v664_v31 = vpop.f32.mrf.mxu0  ;;  %1028 = vmatpush.bf16.msrb.mxu1 %v2828_v24  ;;  %1108 = vmatpush.bf16.msrb.mxu2 %v2860_v14  ;;  %v2843_v24 = vld [vmem:[%s5313_s3 + $0x918] sm:$0xf]  ;;  %v3530_v14 = vld [vmem:[%s5313_s3 + $0xa28] sm:$0xf0] }
 0x2c5   :  { %v665_v35 = vadd.f32 %v664_v31, %v605_v29  ;;  %v2844_v26 = vor.u32 %v3519_v25, %v2843_v24  ;;  %v3518_v29 = vld [vmem:[%s5313_s3 + $0x908] sm:$0xf0]  ;;  %v2888_v15 = vor.u32 %v3530_v14, %v2887_v13  ;;  %v2871_v25 = vld [vmem:[%s5313_s3 + $0x9c0] sm:$0xf]  ;;  %v2976_v13 = vld [vmem:[%s5313_s3 + $0xbb8] sm:$0xf] }
 0x2c6   :  { %v2840_v30 = vor.u32 %v3518_v29, %v2839_v28  ;;  %v2931_v29 = vld [vmem:[%s5313_s3 + $0xb28] sm:$0xf]  ;;  %v3553_v14 = vld [vmem:[%s5313_s3 + $0xbc0] sm:$0xf0] }
 0x2c7   :  { %v668_v38 = vmax.f32 %v665_v35, 0.0 }
 0x2c8   :  { %1029 = vmatpush.bf16.msrb.mxu1 %v2824_v32  ;;  %1109 = vmatpush.bf16.msrb.mxu2 %v2856_v17  ;;  %v2790_v32 = vld [vmem:[%s5313_s3 + $0x7c8] sm:$0xf]  ;;  %v3529_v17 = vld [vmem:[%s5313_s3 + $0xa10] sm:$0xf0] }
 0x2c9   :  { %v686_v43 = vpack.c.bf16 %v668_v38, %v668_v38  ;;  %v2791_v35 = vor.u32 %v3506_v33, %v2790_v32  ;;  %v2782_v38 = vld [vmem:[%s5313_s3 + $0x798] sm:$0xf]  ;;  %v2884_v18 = vor.u32 %v3529_v17, %v2883_v16  ;;  %v3540_v33 = vld [vmem:[%s5313_s3 + $0xb18] sm:$0xf0]  ;;  %v2978_v16 = vld [vmem:[%s5313_s3 + $0xbc4] sm:$0xf0]  ;;  %v2977_v17 = vor.u32 %v3553_v14, %v2976_v13 }
 0x2ca   :  { %v2783_v41 = vor.u32 %v3504_v39, %v2782_v38  ;;  %v3077_v13 = vld [vmem:[%s5313_s3 + $0xc9c] sm:$0xf0]  ;;  %v3083_v14 = vld [vmem:[%s5313_s3 + $0xc98] sm:$0xf] }
 0x2cb   :  { %743 = vmatmul.bf16.vlgmr.msra.gmra.mxu1 %v686_v43  ;;  %895 = vmatpush.bf16.msra.mxu3 %v2791_v35  ;;  %v2778_v43 = vld [vmem:[%s5313_s3 + $0x780] sm:$0xf]  ;;  %v765_v35 = vld [vmem:[%s5314_s4 + $0x1a] ss:$0 sm:$0xff] }
 0x2cc   :  { %v666_v47 = vpop.f32.mrf.mxu0  ;;  %1030 = vmatpush.bf16.msrb.mxu1 %v2820_v40  ;;  %1110 = vmatpush.bf16.msrb.mxu2 %v2852_v20  ;;  %v685_v40 = vld [vmem:[%s5314_s4 + $0x19] ss:$0 sm:$0xff]  ;;  %v3528_v20 = vld [vmem:[%s5313_s3 + $0x9f8] sm:$0xf0] }
 0x2cd   :  { %v2779_v47 = vor.u32 %v3503_v44, %v2778_v43  ;;  %v2880_v21 = vor.u32 %v3528_v20, %v2879_v19  ;;  %v2968_v20 = vld [vmem:[%s5313_s3 + $0xba0] sm:$0xf] }
 0x2cf   :  { %896 = vmatpush.bf16.msra.mxu3 %v2787_v37 }
 0x2d0   :  { %1031 = vmatpush.bf16.msrb.mxu1 %v2816_v48  ;;  %1111 = vmatpush.bf16.msrb.mxu2 %v2848_v23  ;;  %v2774_v48 = vld [vmem:[%s5313_s3 + $0x768] sm:$0xf]  ;;  %v3527_v23 = vld [vmem:[%s5313_s3 + $0x9e0] sm:$0xf0] }
 0x2d1   :  { %v2775_v51 = vor.u32 %v3502_v49, %v2774_v48  ;;  %v2876_v24 = vor.u32 %v3527_v23, %v2875_v22  ;;  %v3539_v48 = vld [vmem:[%s5313_s3 + $0xb00] sm:$0xf0]  ;;  %v2970_v23 = vld [vmem:[%s5313_s3 + $0xbac] sm:$0xf0] }
 0x2d2   :  { %v3550_v22 = vld [vmem:[%s5313_s3 + $0xba4] sm:$0xf] }
 0x2d3   :  { %897 = vmatpush.bf16.msra.mxu3 %v2783_v41  ;;  %v1056_v41 = vld [vmem:[%s5314_s4 + $0x1e] ss:$0 sm:$0xff] }
 0x2d4   :  { %v955_v58 = vpop.f32.mrf.mxu0  ;;  %1032 = vmatpush.bf16.msrb.mxu1 %v2812_v54  ;;  %1112 = vmatpush.bf16.msrb.mxu2 %v2844_v26  ;;  %v3501_v54 = vld [vmem:[%s5313_s3 + $0x758] sm:$0xf0]  ;;  %v3526_v26 = vld [vmem:[%s5313_s3 + $0x9c8] sm:$0xf0] }
 0x2d5   :  { %v956_v60 = vadd.f32 %v955_v58, %v915_v57  ;;  %v2771_v55 = vor.u32 %v3501_v54, %v2770_v53  ;;  %v3500_v57 = vld [vmem:[%s5313_s3 + $0x740] sm:$0xf0]  ;;  %v976_v58 = vld [vmem:[%s5314_s4 + $0x1d] ss:$0 sm:$0xff]  ;;  %v2872_v28 = vor.u32 %v3526_v26, %v2871_v25  ;;  %v2915_v53 = vld [vmem:[%s5313_s3 + $0xac8] sm:$0xf]  ;;  %v2973_v25 = vor.u32 %v3550_v22, %v2970_v23 }
 0x2d6   :  { %v3537_v54 = vld [vmem:[%s5313_s3 + $0xad0] sm:$0xf0]  ;;  %v2960_v26 = vld [vmem:[%s5313_s3 + $0xb88] sm:$0xf] }
 0x2d7   :  { %v959_v61 = vmax.f32 %v956_v60, 0.0  ;;  %898 = vmatpush.bf16.msra.mxu3 %v2779_v47  ;;  %v2923_v47 = vld [vmem:[%s5313_s3 + $0xaf8] sm:$0xf]  ;;  %v3065_v23 = vld [vmem:[%s5313_s3 + $0xc84] sm:$0xf0] }
 0x2d8   :  { %1033 = vmatpush.bf16.msrb.mxu1 %v2808_v59  ;;  %1113 = vmatpush.bf16.msrb.mxu2 %v2840_v30  ;;  %v2767_v59 = vor.u32 %v3500_v57, %v2766_v56  ;;  %v3541_v30 = vld [vmem:[%s5313_s3 + $0xb30] sm:$0xf0]  ;;  %v2924_v49 = vor.u32 %v3539_v48, %v2923_v47  ;;  %v2911_v56 = vld [vmem:[%s5313_s3 + $0xab0] sm:$0xf]  ;;  %v3536_v57 = vld [vmem:[%s5313_s3 + $0xab8] sm:$0xf0] }
 0x2d9   :  { %v977_v62 = vpack.c.bf16 %v959_v61, %v959_v61  ;;  %v2762_v61 = vld [vmem:[%s5313_s3 + $0x720] sm:$0xf]  ;;  %v2932_v32 = vor.u32 %v3541_v30, %v2931_v29  ;;  %v3548_v29 = vld [vmem:[%s5313_s3 + $0xb8c] sm:$0xf]  ;;  %v2962_v30 = vld [vmem:[%s5313_s3 + $0xb94] sm:$0xf0] }
 0x2da   :  { %v3545_v47 = vld [vmem:[%s5313_s3 + $0xb60] sm:$0xf0]  ;;  %v3544_v48 = vld [vmem:[%s5313_s3 + $0xb5c] sm:$0xf] }
 0x2db   :  { %1034 = vmatmul.bf16.vlgmr.msrb.gmra.mxu1 %v977_v62  ;;  %899 = vmatpush.bf16.msra.mxu3 %v2775_v51  ;;  %v3499_v62 = vld [vmem:[%s5313_s3 + $0x728] sm:$0xf0] }
 0x2dc   :  { %v957_v63 = vpop.f32.mrf.mxu0  ;;  %v2763_v3 = vor.u32 %v3499_v62, %v2762_v61  ;;  %1266 = vmatpush.bf16.msra.mxu0 %v2932_v32  ;;  %v3538_v51 = vld [vmem:[%s5313_s3 + $0xae8] sm:$0xf0]  ;;  %v2903_v62 = vld [vmem:[%s5313_s3 + $0xa80] sm:$0xf] }
 0x2df   :  { %900 = vmatpush.bf16.msra.mxu3 %v2771_v55  ;;  %v2916_v55 = vor.u32 %v3537_v54, %v2915_v53  ;;  %v3543_v53 = vld [vmem:[%s5313_s3 + $0xb48] sm:$0xf0]  ;;  %v3542_v54 = vld [vmem:[%s5313_s3 + $0xb44] sm:$0xf] }
 0x2e3   :  { %901 = vmatpush.bf16.msra.mxu3 %v2767_v59  ;;  %v2907_v59 = vld [vmem:[%s5313_s3 + $0xa98] sm:$0xf] }
 0x2e7   :  { %902 = vmatpush.bf16.msra.mxu3 %v2763_v3  ;;  %v3556_v3 = vld [vmem:[%s5313_s3 + $0xbec] sm:$0xf] }
 0x2eb   :  { %1186 = vmatpush.bf16.msrb.mxu3 %v2900_v4 }
 0x2ef   :  { %1187 = vmatpush.bf16.msrb.mxu3 %v2896_v9  ;;  %v3554_v9 = vld [vmem:[%s5313_s3 + $0xbd4] sm:$0xf] }
 0x2f3   :  { %1188 = vmatpush.bf16.msrb.mxu3 %v2892_v12  ;;  %v2989_v12 = vor.u32 %v3554_v9, %v2986_v10  ;;  %v3075_v9 = vld [vmem:[%s5313_s3 + $0xc90] sm:$0xf]  ;;  %v3577_v10 = vld [vmem:[%s5313_s3 + $0xc98] sm:$0xf0] }
 0x2f7   :  { %1189 = vmatpush.bf16.msrb.mxu3 %v2888_v15  ;;  %v3552_v15 = vld [vmem:[%s5313_s3 + $0xbbc] sm:$0xf] }
 0x2f8   :  { %v2981_v19 = vor.u32 %v3552_v15, %v2978_v16  ;;  %v3578_v15 = vld [vmem:[%s5313_s3 + $0xca0] sm:$0xf0] }
 0x2fb   :  { %1190 = vmatpush.bf16.msrb.mxu3 %v2884_v18 }
 0x2ff   :  { %1191 = vmatpush.bf16.msrb.mxu3 %v2880_v21  ;;  %v3551_v21 = vld [vmem:[%s5313_s3 + $0xba8] sm:$0xf0] }
 0x303   :  { %1192 = vmatpush.bf16.msrb.mxu3 %v2876_v24  ;;  %v2969_v24 = vor.u32 %v3551_v21, %v2968_v20  ;;  %v3574_v20 = vld [vmem:[%s5313_s3 + $0xc80] sm:$0xf0]  ;;  %v3573_v21 = vld [vmem:[%s5313_s3 + $0xc7c] sm:$0xf] }
 0x307   :  { %1193 = vmatpush.bf16.msrb.mxu3 %v2872_v28  ;;  %v3549_v28 = vld [vmem:[%s5313_s3 + $0xb90] sm:$0xf0] }
 0x338   :  { %v4343_v27 = vpop.f32.mrf.mxu1 }
 0x340   :  { %v426_v31 = vpop.f32.mrf.mxu1 }
 0x341   :  { %v2927_v31 = vld [vmem:[%s5313_s3 + $0xb10] sm:$0xf] }
 0x342   :  { %v2928_v34 = vor.u32 %v3540_v33, %v2927_v31  ;;  %v2961_v31 = vor.u32 %v3549_v28, %v2960_v26  ;;  %v2965_v33 = vor.u32 %v3548_v29, %v2962_v30  ;;  %v3068_v26 = vor.u32 %v3573_v21, %v3065_v23  ;;  %v3051_v29 = vld [vmem:[%s5313_s3 + $0xc60] sm:$0xf]  ;;  %v3571_v30 = vld [vmem:[%s5313_s3 + $0xc68] sm:$0xf0] }
 0x344   :  { %1267 = vmatpush.bf16.msra.mxu0 %v2928_v34  ;;  %v2952_v34 = vld [vmem:[%s5313_s3 + $0xb70] sm:$0xf] }
 0x348   :  { %v744_v42 = vpop.f32.mrf.mxu1  ;;  %1268 = vmatpush.bf16.msra.mxu0 %v2924_v49 }
 0x349   :  { %v745_v45 = vadd.f32 %v744_v42, %v685_v40 }
 0x34b   :  { %v748_v46 = vmax.f32 %v745_v45, 0.0 }
 0x34d   :  { %v766_v50 = vpack.c.bf16 %v748_v46, %v748_v46 }
 0x34f   :  { %823 = vmatmul.bf16.vlgmr.msra.gmra.mxu2 %v766_v50  ;;  %v2919_v50 = vld [vmem:[%s5313_s3 + $0xae0] sm:$0xf] }
 0x350   :  { %v746_v52 = vpop.f32.mrf.mxu1 }
 0x351   :  { %v2920_v52 = vor.u32 %v3538_v51, %v2919_v50  ;;  %v2946_v50 = vld [vmem:[%s5313_s3 + $0xb64] sm:$0xf0] }
 0x352   :  { %v2949_v51 = vor.u32 %v3544_v48, %v2946_v50  ;;  %v3027_v50 = vld [vmem:[%s5313_s3 + $0xc30] sm:$0xf] }
 0x353   :  { %1269 = vmatpush.bf16.msra.mxu0 %v2920_v52  ;;  %v2936_v52 = vld [vmem:[%s5313_s3 + $0xb40] sm:$0xf] }
 0x357   :  { %1270 = vmatpush.bf16.msra.mxu0 %v2916_v55  ;;  %v2937_v55 = vor.u32 %v3543_v53, %v2936_v52  ;;  %v3564_v52 = vld [vmem:[%s5313_s3 + $0xc34] sm:$0xf] }
 0x358   :  { %v1035_v60 = vpop.f32.mrf.mxu1 }
 0x359   :  { %v1036_v63 = vadd.f32 %v1035_v60, %v976_v58  ;;  %v2912_v58 = vor.u32 %v3536_v57, %v2911_v56  ;;  %v3535_v60 = vld [vmem:[%s5313_s3 + $0xaa0] sm:$0xf0]  ;;  %v2938_v56 = vld [vmem:[%s5313_s3 + $0xb4c] sm:$0xf0] }
 0x35a   :  { %v2908_v61 = vor.u32 %v3535_v60, %v2907_v59  ;;  %v2941_v57 = vor.u32 %v3542_v54, %v2938_v56  ;;  %v3035_v56 = vld [vmem:[%s5313_s3 + $0xc38] sm:$0xf] }
 0x35b   :  { %v1039_v2 = vmax.f32 %v1036_v63, 0.0  ;;  %1271 = vmatpush.bf16.msra.mxu0 %v2912_v58  ;;  %v3534_v63 = vld [vmem:[%s5313_s3 + $0xa88] sm:$0xf0]  ;;  %v1216_v58 = vld [vmem:[%s5314_s4 + $0x30] ss:$0 sm:$0xff] }
 0x35c   :  { %v2904_v0 = vor.u32 %v3534_v63, %v2903_v62 }
 0x35d   :  { %v1057_v5 = vpack.c.bf16 %v1039_v2, %v1039_v2  ;;  %v3557_v2 = vld [vmem:[%s5313_s3 + $0xbf0] sm:$0xf0] }
 0x35e   :  { %v2993_v4 = vor.u32 %v3557_v2, %v2992_v1  ;;  %v3580_v1 = vld [vmem:[%s5313_s3 + $0xcb0] sm:$0xf0]  ;;  %v3579_v2 = vld [vmem:[%s5313_s3 + $0xcac] sm:$0xf] }
 0x35f   :  { %1114 = vmatmul.bf16.vlgmr.msrb.gmra.mxu2 %v1057_v5  ;;  %1272 = vmatpush.bf16.msra.mxu0 %v2908_v61  ;;  %v2994_v5 = vld [vmem:[%s5313_s3 + $0xbf4] sm:$0xf0] }
 0x360   :  { %v1037_v8 = vpop.f32.mrf.mxu1  ;;  %1384 = vmatpush.bf16.msra.mxu1 %v2993_v4  ;;  %v3089_v4 = vld [vmem:[%s5313_s3 + $0xcb4] sm:$0xf0] }
 0x361   :  { %v2997_v8 = vor.u32 %v3556_v3, %v2994_v5  ;;  %v3095_v5 = vld [vmem:[%s5313_s3 + $0xcb0] sm:$0xf]  ;;  %v3092_v7 = vor.u32 %v3579_v2, %v3089_v4  ;;  %v3023_v2 = vld [vmem:[%s5313_s3 + $0xc20] sm:$0xf] }
 0x363   :  { %1273 = vmatpush.bf16.msra.mxu0 %v2904_v0  ;;  %1397 = vmatpush.bf16.msra.mxu2 %v2997_v8  ;;  %v3087_v0 = vld [vmem:[%s5313_s3 + $0xca8] sm:$0xf]  ;;  %v3096_v8 = vor.u32 %v3581_v6, %v3095_v5 }
 0x364   :  { %1385 = vmatpush.bf16.msra.mxu1 %v2985_v11  ;;  %v3088_v3 = vor.u32 %v3580_v1, %v3087_v0  ;;  %v3576_v11 = vld [vmem:[%s5313_s3 + $0xc94] sm:$0xf]  ;;  %v3017_v1 = vld [vmem:[%s5313_s3 + $0xc24] sm:$0xf0] }
 0x365   :  { %v3080_v16 = vor.u32 %v3576_v11, %v3077_v13  ;;  %v3011_v11 = vld [vmem:[%s5313_s3 + $0xc08] sm:$0xf] }
 0x367   :  { %1398 = vmatpush.bf16.msra.mxu2 %v2989_v12  ;;  %1634 = vmatpush.bf16.msrb.mxu0 %v3092_v7  ;;  %v3076_v12 = vor.u32 %v3577_v10, %v3075_v9  ;;  %v3003_v7 = vld [vmem:[%s5313_s3 + $0xc00] sm:$0xf]  ;;  %v3558_v9 = vld [vmem:[%s5313_s3 + $0xc04] sm:$0xf]  ;;  %v3005_v10 = vld [vmem:[%s5313_s3 + $0xc0c] sm:$0xf0] }
 0x368   :  { %1386 = vmatpush.bf16.msra.mxu1 %v2977_v17  ;;  %v3084_v17 = vor.u32 %v3578_v15, %v3083_v14 }
 0x36b   :  { %1399 = vmatpush.bf16.msra.mxu2 %v2981_v19  ;;  %1635 = vmatpush.bf16.msrb.mxu0 %v3080_v16  ;;  %v3063_v19 = vld [vmem:[%s5313_s3 + $0xc78] sm:$0xf]  ;;  %v3008_v16 = vor.u32 %v3558_v9, %v3005_v10  ;;  %v3634_v10 = vld [vmem:[%s5313_s3 + $0xe60] sm:$0xf0] }
 0x36c   :  { %1387 = vmatpush.bf16.msra.mxu1 %v2969_v24  ;;  %v3064_v22 = vor.u32 %v3574_v20, %v3063_v19  ;;  %v3071_v24 = vld [vmem:[%s5313_s3 + $0xc80] sm:$0xf]  ;;  %v3304_v9 = vld [vmem:[%s5313_s3 + $0xe58] sm:$0xf] }
 0x36f   :  { %1400 = vmatpush.bf16.msra.mxu2 %v2973_v25  ;;  %v3575_v25 = vld [vmem:[%s5313_s3 + $0xc88] sm:$0xf0]  ;;  %1636 = vmatpush.bf16.msrb.mxu0 %v3068_v26  ;;  %v3268_v26 = vld [vmem:[%s5313_s3 + $0xe10] sm:$0xf] }
 0x370   :  { %1388 = vmatpush.bf16.msra.mxu1 %v2961_v31  ;;  %v3072_v28 = vor.u32 %v3575_v25, %v3071_v24  ;;  %v3570_v31 = vld [vmem:[%s5313_s3 + $0xc64] sm:$0xf]  ;;  %v3280_v24 = vld [vmem:[%s5313_s3 + $0xe28] sm:$0xf]  ;;  %v3628_v25 = vld [vmem:[%s5313_s3 + $0xe30] sm:$0xf0] }
 0x373   :  { %1401 = vmatpush.bf16.msra.mxu2 %v2965_v33  ;;  %v3053_v33 = vld [vmem:[%s5313_s3 + $0xc6c] sm:$0xf0] }
 0x3d2   :  { %v824_v36 = vpop.f32.mrf.mxu2 }
 0x3d3   :  { %v825_v37 = vadd.f32 %v824_v36, %v765_v35  ;;  %v3547_v35 = vld [vmem:[%s5313_s3 + $0xb78] sm:$0xf0]  ;;  %v3546_v36 = vld [vmem:[%s5313_s3 + $0xb74] sm:$0xf] }
 0x3d5   :  { %v828_v38 = vmax.f32 %v825_v37, 0.0  ;;  %v2954_v37 = vld [vmem:[%s5313_s3 + $0xb7c] sm:$0xf0] }
 0x3d7   :  { %v846_v39 = vpack.c.bf16 %v828_v38, %v828_v38  ;;  %v2953_v38 = vor.u32 %v3547_v35, %v2952_v34  ;;  %v3059_v34 = vld [vmem:[%s5313_s3 + $0xc68] sm:$0xf]  ;;  %v3572_v35 = vld [vmem:[%s5313_s3 + $0xc70] sm:$0xf0] }
 0x3d9   :  { %903 = vmatmul.bf16.vlgmr.msra.gmra.mxu3 %v846_v39  ;;  %v2957_v39 = vor.u32 %v3546_v36, %v2954_v37  ;;  %1389 = vmatpush.bf16.msra.mxu1 %v2953_v38  ;;  %v3056_v36 = vor.u32 %v3570_v31, %v3053_v33  ;;  %v3060_v37 = vor.u32 %v3572_v35, %v3059_v34  ;;  %v2933_v38 = vld [vmem:[%s5314_s4 + $0x31] ss:$8 sm:$0x3]  ;;  %v3604_v33 = vld [vmem:[%s5313_s3 + $0xd70] sm:$0xf0] }
 0x3da   :  { %v826_v40 = vpop.f32.mrf.mxu2  ;;  %1621 = vmatpush.bf16.msra.mxu3 %v3088_v3  ;;  %v3563_v3 = vld [vmem:[%s5313_s3 + $0xc28] sm:$0xf0]  ;;  %v3256_v31 = vld [vmem:[%s5313_s3 + $0xdf8] sm:$0xf] }
 0x3db   :  { %v1136_v40 = vld [vmem:[%s5314_s4 + $0x1f] ss:$0 sm:$0xff]  ;;  %1402 = vmatpush.bf16.msra.mxu2 %v2957_v39  ;;  %1637 = vmatpush.bf16.msrb.mxu0 %v3056_v36  ;;  %v3039_v39 = vld [vmem:[%s5313_s3 + $0xc48] sm:$0xf]  ;;  %v3024_v6 = vor.u32 %v3563_v3, %v3023_v2  ;;  %v3622_v36 = vld [vmem:[%s5313_s3 + $0xe00] sm:$0xf0] }
 0x3dc   :  { %v3232_v2 = vld [vmem:[%s5313_s3 + $0xdc8] sm:$0xf] }
 0x3de   :  { %1622 = vmatpush.bf16.msra.mxu3 %v3076_v12  ;;  %v3560_v12 = vld [vmem:[%s5313_s3 + $0xc10] sm:$0xf0] }
 0x3df   :  { %1403 = vmatpush.bf16.msra.mxu2 %v2949_v51  ;;  %v3565_v51 = vld [vmem:[%s5313_s3 + $0xc38] sm:$0xf0] }
 0x3e0   :  { %v3028_v54 = vor.u32 %v3565_v51, %v3027_v50  ;;  %v3619_v50 = vld [vmem:[%s5313_s3 + $0xde8] sm:$0xf0] }
 0x3e2   :  { %v1115_v42 = vpop.f32.mrf.mxu2  ;;  %1623 = vmatpush.bf16.msra.mxu3 %v3064_v22 }
 0x3e3   :  { %v1116_v43 = vadd.f32 %v1115_v42, %v1056_v41  ;;  %1404 = vmatpush.bf16.msra.mxu2 %v2941_v57  ;;  %v3566_v57 = vld [vmem:[%s5313_s3 + $0xc40] sm:$0xf0] }
 0x3e5   :  { %v1119_v44 = vmax.f32 %v1116_v43, 0.0 }
 0x3e7   :  { %v1137_v45 = vpack.c.bf16 %v1119_v44, %v1119_v44 }
 0x3e9   :  { %1194 = vmatmul.bf16.vlgmr.msrb.gmra.mxu3 %v1137_v45 }
 0x3ea   :  { %v1117_v46 = vpop.f32.mrf.mxu2 }
 0x3eb   :  { %v2944_v46 = vld [vmem:[%s5313_s3 + $0xb58] sm:$0xf] }
 0x3ec   :  { %v2945_v49 = vor.u32 %v3545_v47, %v2944_v46  ;;  %v1300_v46 = vperm.slane %v2933_v38, 0 }
 0x3ee   :  { %1390 = vmatpush.bf16.msra.mxu1 %v2945_v49  ;;  %v1301_v49 = vperm.slane %v2933_v38, 1  ;;  %v3172_v38 = vld [vmem:[%s5313_s3 + $0xd50] sm:$0xf] }
 0x3f2   :  { %1391 = vmatpush.bf16.msra.mxu1 %v2937_v55  ;;  %v3029_v55 = vld [vmem:[%s5313_s3 + $0xc3c] sm:$0xf0] }
 0x3f6   :  { %1647 = vmatpush.bf16.msrb.mxu1 %v3096_v8  ;;  %v3559_v8 = vld [vmem:[%s5313_s3 + $0xc08] sm:$0xf0] }
 0x3f7   :  { %v3004_v14 = vor.u32 %v3559_v8, %v3003_v7  ;;  %v3616_v7 = vld [vmem:[%s5313_s3 + $0xdd0] sm:$0xf0] }
 0x3fa   :  { %1648 = vmatpush.bf16.msrb.mxu1 %v3084_v17  ;;  %v3012_v17 = vor.u32 %v3560_v12, %v3011_v11 }
 0x3fe   :  { %1649 = vmatpush.bf16.msrb.mxu1 %v3072_v28  ;;  %v3625_v28 = vld [vmem:[%s5313_s3 + $0xe18] sm:$0xf0] }
 0x3ff   :  { %v3269_v35 = vor.u32 %v3625_v28, %v3268_v26  ;;  %v3292_v26 = vld [vmem:[%s5313_s3 + $0xe40] sm:$0xf] }
 0x402   :  { %1650 = vmatpush.bf16.msrb.mxu1 %v3060_v37 }
 0x45c   :  { %v4543_v18 = vpop.f32.mrf.mxu3 }
 0x464   :  { %v906_v32 = vpop.f32.mrf.mxu3 }
 0x465   :  { %v3052_v32 = vor.u32 %v3571_v30, %v3051_v29  ;;  %v3281_v29 = vor.u32 %v3628_v25, %v3280_v24  ;;  %v3233_v25 = vor.u32 %v3616_v7, %v3232_v2  ;;  %v3605_v2 = vld [vmem:[%s5313_s3 + $0xd78] sm:$0xf0] }
 0x467   :  { %1624 = vmatpush.bf16.msra.mxu3 %v3052_v32  ;;  %v3184_v32 = vld [vmem:[%s5313_s3 + $0xd68] sm:$0xf] }
 0x468   :  { %v3185_v37 = vor.u32 %v3604_v33, %v3184_v32  ;;  %v3631_v32 = vld [vmem:[%s5313_s3 + $0xe48] sm:$0xf0] }
 0x46a   :  { %2079 = vmatpush.bf16.msrb.mxu2 %v3185_v37 }
 0x46c   :  { %v1195_v41 = vpop.f32.mrf.mxu3 }
 0x46d   :  { %v1196_v42 = vadd.f32 %v1195_v41, %v1136_v40  ;;  %v3568_v40 = vld [vmem:[%s5313_s3 + $0xc50] sm:$0xf0]  ;;  %v3567_v41 = vld [vmem:[%s5313_s3 + $0xc4c] sm:$0xf] }
 0x46f   :  { %v1199_v43 = vmax.f32 %v1196_v42, 0.0  ;;  %v3040_v42 = vor.u32 %v3568_v40, %v3039_v39  ;;  %v3601_v39 = vld [vmem:[%s5313_s3 + $0xd58] sm:$0xf0]  ;;  %v3627_v40 = vld [vmem:[%s5313_s3 + $0xe2c] sm:$0xf] }
 0x471   :  { %v1217_v44 = vpack.c.bf16 %v1199_v43, %v1199_v43  ;;  %v3041_v43 = vld [vmem:[%s5313_s3 + $0xc54] sm:$0xf0]  ;;  %1625 = vmatpush.bf16.msra.mxu3 %v3040_v42 }
 0x472   :  { %v3044_v47 = vor.u32 %v3567_v41, %v3041_v43  ;;  %v3282_v41 = vld [vmem:[%s5313_s3 + $0xe34] sm:$0xf0] }
 0x473   :  { %1274 = vmatmul.bf16.vlgmr.msra.gmra.mxu0 %v1217_v44  ;;  %v3047_v44 = vld [vmem:[%s5313_s3 + $0xc50] sm:$0xf] }
 0x474   :  { %v1197_v45 = vpop.f32.mrf.mxu3  ;;  %1638 = vmatpush.bf16.msrb.mxu0 %v3044_v47  ;;  %v3328_v47 = vld [vmem:[%s5313_s3 + $0xe88] sm:$0xf] }
 0x475   :  { %v3569_v45 = vld [vmem:[%s5313_s3 + $0xc58] sm:$0xf0]  ;;  %1626 = vmatpush.bf16.msra.mxu3 %v3028_v54 }
 0x476   :  { %v3048_v48 = vor.u32 %v3569_v45, %v3047_v44  ;;  %v3244_v44 = vld [vmem:[%s5313_s3 + $0xde0] sm:$0xf]  ;;  %v3173_v45 = vor.u32 %v3601_v39, %v3172_v38  ;;  %v3124_v39 = vld [vmem:[%s5313_s3 + $0xcf0] sm:$0xf] }
 0x478   :  { %1651 = vmatpush.bf16.msrb.mxu1 %v3048_v48  ;;  %v3640_v48 = vld [vmem:[%s5313_s3 + $0xe90] sm:$0xf0]  ;;  %2080 = vmatpush.bf16.msrb.mxu2 %v3173_v45 }
 0x479   :  { %v3329_v51 = vor.u32 %v3640_v48, %v3328_v47  ;;  %v3610_v47 = vld [vmem:[%s5313_s3 + $0xda0] sm:$0xf0] }
 0x4f0   :  { %v1275_v59 = vpop.f32.mrf.mxu0 }
 0x4f1   :  { %v1276_v60 = vadd.f32 %v1275_v59, %v1216_v58  ;;  %v3032_v59 = vor.u32 %v3564_v52, %v3029_v55  ;;  %v3160_v52 = vld [vmem:[%s5313_s3 + $0xd38] sm:$0xf]  ;;  %v3624_v55 = vld [vmem:[%s5313_s3 + $0xe14] sm:$0xf] }
 0x4f3   :  { %v1279_v61 = vmax.f32 %v1276_v60, 0.0  ;;  %v3036_v60 = vor.u32 %v3566_v57, %v3035_v56  ;;  %1639 = vmatpush.bf16.msrb.mxu0 %v3032_v59  ;;  %v3270_v56 = vld [vmem:[%s5313_s3 + $0xe1c] sm:$0xf0]  ;;  %v3316_v59 = vld [vmem:[%s5313_s3 + $0xe70] sm:$0xf] }
 0x4f5   :  { %v1298_v62 = vpack.c.bf16 %v1279_v61, %v1279_v61  ;;  %v3015_v61 = vld [vmem:[%s5313_s3 + $0xc18] sm:$0xf]  ;;  %1652 = vmatpush.bf16.msrb.mxu1 %v3036_v60 }
 0x4f7   :  { %1392 = vmatmul.bf16.vlgmr.msra.gmra.mxu1 %v1298_v62  ;;  %1405 = vmatmul.bf16.vlgmr.msra.gmra.mxu2 %v1298_v62  ;;  %v3562_v62 = vld [vmem:[%s5313_s3 + $0xc20] sm:$0xf0] }
 0x4f8   :  { %v1277_v63 = vpop.f32.mrf.mxu0  ;;  %v3016_v0 = vor.u32 %v3562_v62, %v3015_v61  ;;  %v3637_v61 = vld [vmem:[%s5313_s3 + $0xe78] sm:$0xf0]  ;;  %v3148_v62 = vld [vmem:[%s5313_s3 + $0xd20] sm:$0xf] }
 0x4f9   :  { %v3561_v63 = vld [vmem:[%s5313_s3 + $0xc1c] sm:$0xf]  ;;  %1653 = vmatpush.bf16.msrb.mxu1 %v3024_v6  ;;  %v3317_v3 = vor.u32 %v3637_v61, %v3316_v59 }
 0x4fa   :  { %v3020_v5 = vor.u32 %v3561_v63, %v3017_v1  ;;  %1627 = vmatpush.bf16.msra.mxu3 %v3016_v0  ;;  %v3595_v63 = vld [vmem:[%s5313_s3 + $0xd28] sm:$0xf0]  ;;  %v3245_v1 = vor.u32 %v3619_v50, %v3244_v44 }
 0x4fb   :  { %v3149_v12 = vor.u32 %v3595_v63, %v3148_v62  ;;  %v3196_v62 = vld [vmem:[%s5313_s3 + $0xd80] sm:$0xf]  ;;  %v3603_v63 = vld [vmem:[%s5313_s3 + $0xd6c] sm:$0xf] }
 0x4fc   :  { %1640 = vmatpush.bf16.msrb.mxu0 %v3020_v5  ;;  %v3258_v5 = vld [vmem:[%s5313_s3 + $0xe04] sm:$0xf0] }
 0x4fd   :  { %1654 = vmatpush.bf16.msrb.mxu1 %v3012_v17 }
 0x4fe   :  { %1628 = vmatpush.bf16.msra.mxu3 %v3004_v14  ;;  %v3136_v14 = vld [vmem:[%s5313_s3 + $0xd08] sm:$0xf] }
 0x500   :  { %1641 = vmatpush.bf16.msrb.mxu0 %v3008_v16 }
 0x502   :  { %2092 = vmatpush.bf16.msrb.mxu3 %v3281_v29  ;;  %v3220_v29 = vld [vmem:[%s5313_s3 + $0xdb0] sm:$0xf] }
 0x504   :  { %2109 = vmatpush.bf16.msra.mxu0 %v3329_v51 }
 0x506   :  { %2093 = vmatpush.bf16.msrb.mxu3 %v3269_v35  ;;  %v3293_v35 = vor.u32 %v3631_v32, %v3292_v26  ;;  %v3168_v26 = vld [vmem:[%s5313_s3 + $0xd40] sm:$0xf] }
 0x508   :  { %2110 = vmatpush.bf16.msra.mxu0 %v3317_v3 }
 0x574   :  { %v1393_v53 = vpop.f32.mrf.mxu1 }
 0x575   :  { %v1394_v58 = vadd.f32 %v1393_v53, %v1300_v46  ;;  %v3285_v46 = vor.u32 %v3627_v40, %v3282_v41  ;;  %v3598_v53 = vld [vmem:[%s5313_s3 + $0xd40] sm:$0xf0]  ;;  %v3589_v40 = vld [vmem:[%s5313_s3 + $0xcf8] sm:$0xf0]  ;;  %v3234_v41 = vld [vmem:[%s5313_s3 + $0xdd4] sm:$0xf0] }
 0x576   :  { %v3161_v57 = vor.u32 %v3598_v53, %v3160_v52  ;;  %v3125_v52 = vor.u32 %v3589_v40, %v3124_v39  ;;  %v3612_v53 = vld [vmem:[%s5313_s3 + $0xdb4] sm:$0xf] }
 0x577   :  { %v2998_v4 = vmul.f32 -1.442695, %v1394_v58  ;;  %2131 = vmatpush.bf16.msra.mxu1 %v3285_v46  ;;  %v3273_v58 = vor.u32 %v3624_v55, %v3270_v56  ;;  %v3208_v46 = vld [vmem:[%s5313_s3 + $0xd98] sm:$0xf]  ;;  %v3596_v39 = vld [vmem:[%s5313_s3 + $0xd30] sm:$0xf0] }
 0x578   :  { %2081 = vmatpush.bf16.msrb.mxu2 %v3161_v57  ;;  %v3112_v57 = vld [vmem:[%s5313_s3 + $0xcd8] sm:$0xf]  ;;  %v3209_v59 = vor.u32 %v3610_v47, %v3208_v46  ;;  %v3144_v47 = vld [vmem:[%s5313_s3 + $0xd10] sm:$0xf] }
 0x579   :  { %3663 = vpow2.f32 %v2998_v4  ;;  %v3621_v4 = vld [vmem:[%s5313_s3 + $0xdfc] sm:$0xf] }
 0x57a   :  { %v1406_v13 = vpop.f32.mrf.mxu2  ;;  %v3261_v8 = vor.u32 %v3621_v4, %v3258_v5 }
 0x57b   :  { %v1407_v15 = vadd.f32 %v1406_v13, %v1301_v49  ;;  %v3257_v49 = vor.u32 %v3622_v36, %v3256_v31  ;;  %2132 = vmatpush.bf16.msra.mxu1 %v3273_v58  ;;  %v3305_v13 = vor.u32 %v3634_v10, %v3304_v9  ;;  %v3615_v36 = vld [vmem:[%s5313_s3 + $0xdcc] sm:$0xf]  ;;  %v3586_v58 = vld [vmem:[%s5313_s3 + $0xce0] sm:$0xf0]  ;;  %v3600_v9 = vld [vmem:[%s5313_s3 + $0xd54] sm:$0xf] }
 0x57c   :  { %v1395_v19 = vpop.f32.mrf.mxu1  ;;  %2082 = vmatpush.bf16.msrb.mxu2 %v3149_v12  ;;  %v3237_v48 = vor.u32 %v3615_v36, %v3234_v41  ;;  %v3113_v3 = vor.u32 %v3586_v58, %v3112_v57  ;;  %v3174_v10 = vld [vmem:[%s5313_s3 + $0xd5c] sm:$0xf0]  ;;  %v3602_v12 = vld [vmem:[%s5313_s3 + $0xd60] sm:$0xf0] }
 0x57d   :  { %v2999_v20 = vmul.f32 -1.442695, %v1407_v15  ;;  %2094 = vmatpush.bf16.msrb.mxu3 %v3257_v49  ;;  %v3592_v15 = vld [vmem:[%s5313_s3 + $0xd10] sm:$0xf0]  ;;  %v3618_v19 = vld [vmem:[%s5313_s3 + $0xde4] sm:$0xf]  ;;  %2111 = vmatpush.bf16.msra.mxu0 %v3305_v13  ;;  %v3177_v13 = vor.u32 %v3600_v9, %v3174_v10 }
 0x57e   :  { %v3137_v33 = vor.u32 %v3592_v15, %v3136_v14  ;;  %v845_v49 = vld [vmem:[%s5314_s4 + $0x1b] ss:$0 sm:$0xff]  ;;  %v3100_v15 = vld [vmem:[%s5313_s3 + $0xcc0] sm:$0xf]  ;;  %v3590_v57 = vld [vmem:[%s5313_s3 + $0xd00] sm:$0xf0] }
 0x57f   :  { %v3664_v21 = vpop.eup %3663  ;;  %3665 = vpow2.f32 %v2999_v20  ;;  %v3246_v20 = vld [vmem:[%s5313_s3 + $0xdec] sm:$0xf0]  ;;  %2133 = vmatpush.bf16.msra.mxu1 %v3261_v8  ;;  %v3630_v58 = vld [vmem:[%s5313_s3 + $0xe44] sm:$0xf] }
 0x580   :  { %v4758_v22 = vadd.f32 1.0, %v3664_v21  ;;  %v3249_v31 = vor.u32 %v3618_v19, %v3246_v20  ;;  %2083 = vmatpush.bf16.msrb.mxu2 %v3137_v33  ;;  %v3162_v20 = vld [vmem:[%s5313_s3 + $0xd44] sm:$0xf0]  ;;  %v3150_v33 = vld [vmem:[%s5313_s3 + $0xd2c] sm:$0xf0] }
 0x581   :  { %2095 = vmatpush.bf16.msrb.mxu3 %v3245_v1  ;;  %2112 = vmatpush.bf16.msra.mxu0 %v3293_v35  ;;  %v3192_v1 = vld [vmem:[%s5313_s3 + $0xd70] sm:$0xf]  ;;  %v3606_v35 = vld [vmem:[%s5313_s3 + $0xd84] sm:$0xf] }
 0x582   :  { %3667 = vrcp.f32 %v4758_v22  ;;  %v1408_v23 = vpop.f32.mrf.mxu2  ;;  %v1427_v11 = vand.u32 2147483647, %v4758_v22  ;;  %v1429_v21 = vand.u32 2147483648, %v4758_v22  ;;  %vm1423_vm5 = vweird.f32 %v4758_v22 }
 0x583   :  { %2134 = vmatpush.bf16.msra.mxu1 %v3249_v31  ;;  %v3193_v8 = vor.u32 %v3605_v2, %v3192_v1  ;;  %v3330_v31 = vld [vmem:[%s5313_s3 + $0xe94] sm:$0xf0]  ;;  %v3582_v2 = vld [vmem:[%s5313_s3 + $0xcc4] sm:$0xf] }
 0x584   :  { %vm1428_vm10 = vcmp.eq.f32.partialorder %v1427_v11, 8.507059e+37  ;;  %2084 = vmatpush.bf16.msrb.mxu2 %v3125_v52  ;;  %v3180_v11 = vld [vmem:[%s5313_s3 + $0xd58] sm:$0xf] }
 0x585   :  { %v3666_v30 = vpop.eup %3665  ;;  %2096 = vmatpush.bf16.msrb.mxu3 %v3233_v25  ;;  %v3181_v14 = vor.u32 %v3602_v12, %v3180_v11 }
 0x586   :  { %v4782_v34 = vadd.f32 1.0, %v3666_v30  ;;  %v3613_v30 = vld [vmem:[%s5313_s3 + $0xdb8] sm:$0xf0] }
 0x587   :  { %v3221_v44 = vor.u32 %v3613_v30, %v3220_v29  ;;  %2135 = vmatpush.bf16.msra.mxu1 %v3237_v48  ;;  %v3639_v30 = vld [vmem:[%s5313_s3 + $0xe8c] sm:$0xf]  ;;  %v3593_v48 = vld [vmem:[%s5313_s3 + $0xd18] sm:$0xf0] }
 0x588   :  { %v4799_v42 = vpop.eup %3667  ;;  %3669 = vrcp.f32 %v4782_v34  ;;  %v1444_v23 = vand.u32 2147483648, %v4782_v34  ;;  %v1442_v24 = vand.u32 2147483647, %v4782_v34  ;;  %vm1438_vm8 = vweird.f32 %v4782_v34  ;;  %2085 = vmatpush.bf16.msrb.mxu2 %v3113_v3  ;;  %v3102_v3 = vld [vmem:[%s5313_s3 + $0xccc] sm:$0xf0] }
 0x589   :  { %v1419_v43 = vmul.f32 %v4799_v42, %v4758_v22  ;;  %vm1424_vm4 = vweird.f32 %v4799_v42  ;;  %2097 = vmatpush.bf16.msrb.mxu3 %v3221_v44  ;;  %v3333_v32 = vor.u32 %v3639_v30, %v3330_v31  ;;  %v3594_v22 = vld [vmem:[%s5313_s3 + $0xd24] sm:$0xf]  ;;  %v3591_v44 = vld [vmem:[%s5313_s3 + $0xd0c] sm:$0xf]  ;;  %v3288_v30 = vld [vmem:[%s5313_s3 + $0xe30] sm:$0xf] }
 0x58a   :  { %vm4898_vm7 = vmor %vm1423_vm5, %vm1424_vm4  ;;  %vm1443_vm11 = vcmp.eq.f32.partialorder %v1442_v24, 8.507059e+37  ;;  %v3153_v36 = vor.u32 %v3594_v22, %v3150_v33  ;;  %v3629_v31 = vld [vmem:[%s5313_s3 + $0xe38] sm:$0xf0] }
 0x58b   :  { %v1420_v54 = vsub.f32 1.0, %v1419_v43  ;;  %v1430_v43 = vor.u32 1.1754944e-38, %v1429_v21  ;;  %v3609_v21 = vld [vmem:[%s5313_s3 + $0xd9c] sm:$0xf] }
 0x58d   :  { %v1421_v60 = vmul.f32 %v4799_v42, %v1420_v54  ;;  %v3222_v54 = vld [vmem:[%s5313_s3 + $0xdbc] sm:$0xf0]  ;;  %2098 = vmatpush.bf16.msrb.mxu3 %v3209_v59  ;;  %v3294_v59 = vld [vmem:[%s5313_s3 + $0xe4c] sm:$0xf0] }
 0x58e   :  { %v4841_v0 = vpop.eup %3669 }
 0x58f   :  { %v1434_v6 = vmul.f32 %v4841_v0, %v4782_v34  ;;  %v1422_v17 = vadd.f32 %v4799_v42, %v1421_v60  ;;  %vm1439_vm6 = vweird.f32 %v4841_v0  ;;  %v374_v34 = vld [vmem:[%s5314_s4 + $0x5] ss:$0 sm:$0xff]  ;;  %v905_v60 = vadd.f32 %v4543_v18, %v845_v49  ;;  %v3186_v18 = vld [vmem:[%s5313_s3 + $0xd74] sm:$0xf0] }
 0x590   :  { %vm1440_vm9 = vmor %vm1438_vm8, %vm1439_vm6  ;;  %v425_v55 = vadd.f32 %v4343_v27, %v374_v34  ;;  %v3607_v27 = vld [vmem:[%s5313_s3 + $0xd88] sm:$0xf0]  ;;  %v3189_v7 = vor.u32 %v3603_v63, %v3186_v18  ;;  %v3636_v34 = vld [vmem:[%s5313_s3 + $0xe74] sm:$0xf]  ;;  %v3145_v49 = vor.u32 %v3593_v48, %v3144_v47 }
 0x591   :  { %v1435_v16 = vsub.f32 1.0, %v1434_v6  ;;  %v1426_v37 = vsel %vm4898_vm7, %v4799_v42, %v1422_v17  ;;  %v1445_v42 = vor.u32 1.1754944e-38, %v1444_v23  ;;  %v3197_v5 = vor.u32 %v3607_v27, %v3196_v62  ;;  %v3597_v17 = vld [vmem:[%s5313_s3 + $0xd3c] sm:$0xf]  ;;  %v3210_v23 = vld [vmem:[%s5313_s3 + $0xda4] sm:$0xf0] }
 0x592   :  { %v1431_v50 = vsel %vm1428_vm10, %v1430_v43, %v1426_v37  ;;  %v3165_v24 = vor.u32 %v3597_v17, %v3162_v20  ;;  %v3213_v25 = vor.u32 %v3609_v21, %v3210_v23  ;;  %v3198_v37 = vld [vmem:[%s5313_s3 + $0xd8c] sm:$0xf0]  ;;  %v3318_v43 = vld [vmem:[%s5313_s3 + $0xe7c] sm:$0xf0]  ;;  %v3585_v62 = vld [vmem:[%s5313_s3 + $0xcdc] sm:$0xf] }
 0x593   :  { %v1436_v28 = vmul.f32 %v4841_v0, %v1435_v16  ;;  %2099 = vmatpush.bf16.msrb.mxu3 %v3197_v5  ;;  %v3583_v16 = vld [vmem:[%s5313_s3 + $0xcc8] sm:$0xf0]  ;;  %v3201_v40 = vor.u32 %v3606_v35, %v3198_v37  ;;  %v3114_v27 = vld [vmem:[%s5313_s3 + $0xce4] sm:$0xf0]  ;;  %v3120_v63 = vld [vmem:[%s5313_s3 + $0xce0] sm:$0xf]  ;;  %v3105_v5 = vor.u32 %v3582_v2, %v3102_v3 }
 0x594   :  { %v3101_v19 = vor.u32 %v3583_v16, %v3100_v15  ;;  %v3587_v18 = vld [vmem:[%s5313_s3 + $0xce8] sm:$0xf0]  ;;  %v3336_v15 = vld [vmem:[%s5313_s3 + $0xe90] sm:$0xf]  ;;  %v3641_v16 = vld [vmem:[%s5313_s3 + $0xe98] sm:$0xf0] }
 0x595   :  { %v1437_v38 = vadd.f32 %v4841_v0, %v1436_v28  ;;  %v3599_v28 = vld [vmem:[%s5313_s3 + $0xd48] sm:$0xf0]  ;;  %v3121_v1 = vor.u32 %v3587_v18, %v3120_v63  ;;  %v3337_v23 = vor.u32 %v3641_v16, %v3336_v15  ;;  %v3312_v37 = vld [vmem:[%s5313_s3 + $0xe60] sm:$0xf]  ;;  %v3300_v47 = vld [vmem:[%s5313_s3 + $0xe48] sm:$0xf] }
 0x596   :  { %2086 = vmatpush.bf16.msrb.mxu2 %v3101_v19  ;;  %v3169_v29 = vor.u32 %v3599_v28, %v3168_v26  ;;  %v3324_v26 = vld [vmem:[%s5313_s3 + $0xe78] sm:$0xf]  ;;  %v3638_v28 = vld [vmem:[%s5313_s3 + $0xe80] sm:$0xf0]  ;;  %v3632_v48 = vld [vmem:[%s5313_s3 + $0xe50] sm:$0xf0] }
 0x597   :  { %v1441_v45 = vsel %vm1440_vm9, %v4841_v0, %v1437_v38  ;;  %v3225_v0 = vor.u32 %v3612_v53, %v3222_v54  ;;  %v3156_v38 = vld [vmem:[%s5313_s3 + $0xd28] sm:$0xf]  ;;  %v3588_v53 = vld [vmem:[%s5313_s3 + $0xcf4] sm:$0xf]  ;;  %v3126_v54 = vld [vmem:[%s5313_s3 + $0xcfc] sm:$0xf0]  ;;  %v3325_v35 = vor.u32 %v3638_v28, %v3324_v26 }
 0x598   :  { %v1446_v51 = vsel %vm1443_vm11, %v1445_v42, %v1441_v45  ;;  %v3157_v41 = vor.u32 %v3596_v39, %v3156_v38  ;;  %v3321_v42 = vor.u32 %v3636_v34, %v3318_v43  ;;  %v3138_v45 = vld [vmem:[%s5313_s3 + $0xd14] sm:$0xf0]  ;;  %v3635_v38 = vld [vmem:[%s5313_s3 + $0xe68] sm:$0xf0]  ;;  %v3371_v43 = vld [vmem:[%s5313_s3 + $0xf48] sm:$0xf] }
 0x599   :  { %v1448_v56 = vmul.f32 %v1446_v51, %v1431_v50  ;;  %2136 = vmatpush.bf16.msra.mxu1 %v3225_v0  ;;  %v3141_v46 = vor.u32 %v3591_v44, %v3138_v45  ;;  %v3633_v50 = vld [vmem:[%s5313_s3 + $0xe5c] sm:$0xf]  ;;  %v3306_v51 = vld [vmem:[%s5313_s3 + $0xe64] sm:$0xf0]  ;;  %v3117_v0 = vor.u32 %v3585_v62, %v3114_v27  ;;  %v3313_v34 = vor.u32 %v3635_v38, %v3312_v37  ;;  %v3367_v44 = vld [vmem:[%s5313_s3 + $0xf30] sm:$0xf] }
 0x59a   :  { %2148 = vmatpush.bf16.msra.mxu2 %v3333_v32  ;;  %v3309_v52 = vor.u32 %v3633_v50, %v3306_v51  ;;  %v3648_v50 = vld [vmem:[%s5313_s3 + $0xf38] sm:$0xf0]  ;;  %v3264_v51 = vld [vmem:[%s5313_s3 + $0xe00] sm:$0xf]  ;;  %v3228_v62 = vld [vmem:[%s5313_s3 + $0xdb8] sm:$0xf] }
 0x59b   :  { %v1449_v61 = vmul.f32 %v1448_v56, %v425_v55  ;;  %v3132_v55 = vld [vmem:[%s5313_s3 + $0xcf8] sm:$0xf]  ;;  %v3129_v56 = vor.u32 %v3588_v53, %v3126_v54  ;;  %v3368_v53 = vor.u32 %v3648_v50, %v3367_v44  ;;  %v3301_v54 = vor.u32 %v3632_v48, %v3300_v47  ;;  %v3614_v27 = vld [vmem:[%s5313_s3 + $0xdc0] sm:$0xf0]  ;;  %v3611_v18 = vld [vmem:[%s5313_s3 + $0xda8] sm:$0xf0] }
 0x59c   :  { %v3229_v63 = vor.u32 %v3614_v27, %v3228_v62  ;;  %v3204_v2 = vld [vmem:[%s5313_s3 + $0xd88] sm:$0xf]  ;;  %v3608_v3 = vld [vmem:[%s5313_s3 + $0xd90] sm:$0xf0]  ;;  %v3399_v16 = vld [vmem:[%s5313_s3 + $0xff0] sm:$0xf] }
 0x59d   :  { %v1450_v4 = vmul.f32 %v1449_v61, %v905_v60  ;;  %2137 = vmatpush.bf16.msra.mxu1 %v3213_v25  ;;  %v3133_v60 = vor.u32 %v3590_v57, %v3132_v55  ;;  %v3297_v61 = vor.u32 %v3630_v58, %v3294_v59  ;;  %v3620_v57 = vld [vmem:[%s5313_s3 + $0xdf0] sm:$0xf0]  ;;  %v3240_v59 = vld [vmem:[%s5313_s3 + $0xdd0] sm:$0xf]  ;;  %v3655_v26 = vld [vmem:[%s5313_s3 + $0xfe0] sm:$0xf0] }
 0x59e   :  { %2149 = vmatpush.bf16.msra.mxu2 %v3321_v42  ;;  %v3649_v42 = vld [vmem:[%s5313_s3 + $0xf50] sm:$0xf0]  ;;  %v3387_v37 = vld [vmem:[%s5313_s3 + $0xfa8] sm:$0xf]  ;;  %v3651_v44 = vld [vmem:[%s5313_s3 + $0xf80] sm:$0xf0] }
 0x59f   :  { %v1485_v6 = vpack.c.bf16 %v1450_v4, %v1450_v4  ;;  %v3108_v4 = vld [vmem:[%s5313_s3 + $0xcc8] sm:$0xf]  ;;  %v3645_v15 = vld [vmem:[%s5313_s3 + $0xef0] sm:$0xf0]  ;;  %v3650_v47 = vld [vmem:[%s5313_s3 + $0xf68] sm:$0xf0] }
 0x5a0   :  { %v3411_v27 = vld [vmem:[%s5313_s3 + $0x1038] sm:$0xf] }
 0x5a1   :  { %1629 = vmatmul.bf16.vlgmr.msra.gmra.mxu3 %v1485_v6  ;;  %1642 = vmatmul.bf16.vlgmr.msrb.gmra.mxu0 %v1485_v6 }
 0x5a2   :  { %1655 = vmatmul.bf16.vlgmr.msrb.gmra.mxu1 %v1485_v6  ;;  %2118 = vmatpush.bf16.msrb.mxu0 %v3189_v7  ;;  %v3584_v6 = vld [vmem:[%s5313_s3 + $0xcd0] sm:$0xf0] }
 0x5a3   :  { %2157 = vmatpush.bf16.msra.mxu3 %v3193_v8  ;;  %2138 = vmatpush.bf16.msra.mxu1 %v3201_v40  ;;  %v3109_v7 = vor.u32 %v3584_v6, %v3108_v4  ;;  %v3000_v8 = vld [vmem:[%s5314_s4 + $0x32] ss:$8 sm:$0x7]  ;;  %v3205_v4 = vor.u32 %v3608_v3, %v3204_v2  ;;  %v3647_v6 = vld [vmem:[%s5313_s3 + $0xf20] sm:$0xf0] }
 0x5a4   :  { %2150 = vmatpush.bf16.msra.mxu2 %v3309_v52  ;;  %v1488_v9 = vperm.slane %v3000_v8, 1  ;;  %v1489_v10 = vperm.slane %v3000_v8, 2  ;;  %v1487_v19 = vperm.slane %v3000_v8, 0  ;;  %v3276_v40 = vld [vmem:[%s5313_s3 + $0xe18] sm:$0xf] }
 0x5a5   :  { %v3623_v52 = vld [vmem:[%s5313_s3 + $0xe08] sm:$0xf0]  ;;  %v3359_v8 = vld [vmem:[%s5313_s3 + $0xf00] sm:$0xf] }
 0x5a6   :  { %2119 = vmatpush.bf16.msrb.mxu0 %v3177_v13  ;;  %v3265_v55 = vor.u32 %v3623_v52, %v3264_v51  ;;  %v3419_v51 = vld [vmem:[%s5313_s3 + $0x1068] sm:$0xf]  ;;  %v3661_v52 = vld [vmem:[%s5313_s3 + $0x1070] sm:$0xf0]  ;;  %v3407_v3 = vld [vmem:[%s5313_s3 + $0x1020] sm:$0xf] }
 0x5a7   :  { %2158 = vmatpush.bf16.msra.mxu3 %v3181_v14 }
 0x5a8   :  { %2151 = vmatpush.bf16.msra.mxu2 %v3297_v61 }
 0x5aa   :  { %2120 = vmatpush.bf16.msrb.mxu0 %v3165_v24 }
 0x5ab   :  { %2159 = vmatpush.bf16.msra.mxu3 %v3169_v29 }
 0x5ae   :  { %2121 = vmatpush.bf16.msrb.mxu0 %v3153_v36  ;;  %v3289_v36 = vor.u32 %v3629_v31, %v3288_v30  ;;  %v3643_v30 = vld [vmem:[%s5313_s3 + $0xec0] sm:$0xf0]  ;;  %v3391_v31 = vld [vmem:[%s5313_s3 + $0xfc0] sm:$0xf] }
 0x5af   :  { %2160 = vmatpush.bf16.msra.mxu3 %v3157_v41  ;;  %v3626_v41 = vld [vmem:[%s5313_s3 + $0xe20] sm:$0xf0] }
 0x5b2   :  { %2122 = vmatpush.bf16.msrb.mxu0 %v3141_v46  ;;  %v3277_v46 = vor.u32 %v3626_v41, %v3276_v40  ;;  %v3383_v41 = vld [vmem:[%s5313_s3 + $0xf90] sm:$0xf] }
 0x5b3   :  { %2161 = vmatpush.bf16.msra.mxu3 %v3145_v49  ;;  %v3372_v49 = vor.u32 %v3649_v42, %v3371_v43  ;;  %v3379_v42 = vld [vmem:[%s5313_s3 + $0xf78] sm:$0xf] }
 0x5b5   :  { %2366 = vmatpush.bf16.msrb.mxu1 %v3372_v49 }
 0x5b6   :  { %2123 = vmatpush.bf16.msrb.mxu0 %v3129_v56  ;;  %v3252_v56 = vld [vmem:[%s5313_s3 + $0xde8] sm:$0xf] }
 0x5b7   :  { %2162 = vmatpush.bf16.msra.mxu3 %v3133_v60  ;;  %v3253_v58 = vor.u32 %v3620_v57, %v3252_v56  ;;  %v3617_v60 = vld [vmem:[%s5313_s3 + $0xdd8] sm:$0xf0]  ;;  %v3415_v57 = vld [vmem:[%s5313_s3 + $0x1050] sm:$0xf] }
 0x5b8   :  { %v3241_v61 = vor.u32 %v3617_v60, %v3240_v59 }
 0x5b9   :  { %2367 = vmatpush.bf16.msrb.mxu1 %v3368_v53  ;;  %v3420_v53 = vor.u32 %v3661_v52, %v3419_v51 }
 0x5ba   :  { %2124 = vmatpush.bf16.msrb.mxu0 %v3117_v0  ;;  %v3216_v0 = vld [vmem:[%s5313_s3 + $0xda0] sm:$0xf] }
 0x5bb   :  { %2163 = vmatpush.bf16.msra.mxu3 %v3121_v1  ;;  %v3217_v1 = vor.u32 %v3611_v18, %v3216_v0 }
 0x5be   :  { %2125 = vmatpush.bf16.msrb.mxu0 %v3105_v5  ;;  %v3363_v5 = vld [vmem:[%s5313_s3 + $0xf18] sm:$0xf] }
 0x5bf   :  { %2164 = vmatpush.bf16.msra.mxu3 %v3109_v7  ;;  %v3364_v7 = vor.u32 %v3647_v6, %v3363_v5 }
 0x5c1   :  { %2368 = vmatpush.bf16.msrb.mxu1 %v3364_v7 }
 0x61e   :  { %v1643_v11 = vpop.f32.mrf.mxu0 }
 0x61f   :  { %v1644_v12 = vadd.f32 %v1643_v11, %v1488_v9  ;;  %v1656_v13 = vpop.f32.mrf.mxu1  ;;  %v3646_v9 = vld [vmem:[%s5313_s3 + $0xf08] sm:$0xf0] }
 0x620   :  { %v1657_v14 = vadd.f32 %v1656_v13, %v1489_v10  ;;  %v3403_v10 = vld [vmem:[%s5313_s3 + $0x1008] sm:$0xf]  ;;  %v3360_v11 = vor.u32 %v3646_v9, %v3359_v8 }
 0x621   :  { %v1661_v17 = vmax.f32 %v1644_v12, 0.0  ;;  %v3657_v12 = vld [vmem:[%s5313_s3 + $0x1010] sm:$0xf0] }
 0x622   :  { %v1662_v20 = vmax.f32 %v1657_v14, 0.0  ;;  %v3404_v13 = vor.u32 %v3657_v12, %v3403_v10  ;;  %2369 = vmatpush.bf16.msrb.mxu1 %v3360_v11  ;;  %v3355_v14 = vld [vmem:[%s5313_s3 + $0xee8] sm:$0xf] }
 0x623   :  { %v5101_v21 = vpack.c.bf16 %v1661_v17, %v1661_v17  ;;  %v3356_v17 = vor.u32 %v3645_v15, %v3355_v14 }
 0x624   :  { %v5103_v24 = vpack.c.bf16 %v1662_v20, %v1662_v20  ;;  %v1630_v25 = vpop.f32.mrf.mxu3 }
 0x625   :  { %v1631_v29 = vadd.f32 %v1630_v25, %v1487_v19  ;;  %2100 = vmatmul.bf16.vlgmr.msrb.gmra.mxu3 %v5101_v21  ;;  %2139 = vmatmul.bf16.vlgmr.msra.gmra.mxu1 %v5101_v21  ;;  %v3656_v19 = vld [vmem:[%s5313_s3 + $0xff8] sm:$0xf0]  ;;  %v3395_v25 = vld [vmem:[%s5313_s3 + $0xfd8] sm:$0xf] }
 0x626   :  { %3338 = vmatmul.msk.bf16.vlgmr.msra.gmra.mxu0 %vm2075_vm12, %v5103_v24  ;;  %v1645_v32 = vpop.f32.mrf.mxu0  ;;  %2379 = vmatpush.bf16.msrb.mxu3 %v3404_v13  ;;  %v3400_v20 = vor.u32 %v3656_v19, %v3399_v16  ;;  %v3396_v28 = vor.u32 %v3655_v26, %v3395_v25 }
 0x627   :  { %v1660_v22 = vmax.f32 %v1631_v29, 0.0  ;;  %v1658_v33 = vpop.f32.mrf.mxu1  ;;  %2187 = vmatpush.bf16.msra.mxu0 %v3337_v23  ;;  %2370 = vmatpush.bf16.msrb.mxu1 %v3356_v17  ;;  %v3644_v23 = vld [vmem:[%s5313_s3 + $0xed8] sm:$0xf0]  ;;  %v3347_v29 = vld [vmem:[%s5313_s3 + $0xeb8] sm:$0xf] }
 0x628   :  { %v3348_v32 = vor.u32 %v3643_v30, %v3347_v29 }
 0x629   :  { %v1745_v39 = vpack.c.bf16 %v1660_v22, %v1660_v22  ;;  %v3654_v22 = vld [vmem:[%s5313_s3 + $0xfc8] sm:$0xf0] }
 0x62a   :  { %2380 = vmatpush.bf16.msrb.mxu3 %v3400_v20  ;;  %v3392_v33 = vor.u32 %v3654_v22, %v3391_v31 }
 0x62b   :  { %2087 = vmatmul.bf16.vlgmr.msrb.gmra.mxu2 %v1745_v39  ;;  %2188 = vmatpush.bf16.msra.mxu0 %v3325_v35  ;;  %v3343_v35 = vld [vmem:[%s5313_s3 + $0xea0] sm:$0xf] }
 0x62c   :  { %v1632_v45 = vpop.f32.mrf.mxu3  ;;  %2170 = vmatpush.bf16.msrb.mxu2 %v3289_v36  ;;  %v3642_v36 = vld [vmem:[%s5313_s3 + $0xea8] sm:$0xf0] }
 0x62d   :  { %v3344_v38 = vor.u32 %v3642_v36, %v3343_v35  ;;  %v3380_v45 = vor.u32 %v3651_v44, %v3379_v42 }
 0x62e   :  { %2381 = vmatpush.bf16.msrb.mxu3 %v3396_v28 }
 0x62f   :  { %2189 = vmatpush.bf16.msra.mxu0 %v3313_v34  ;;  %v3652_v34 = vld [vmem:[%s5313_s3 + $0xf98] sm:$0xf0] }
 0x630   :  { %2171 = vmatpush.bf16.msrb.mxu2 %v3277_v46  ;;  %v3384_v43 = vor.u32 %v3652_v34, %v3383_v41  ;;  %v3375_v46 = vld [vmem:[%s5313_s3 + $0xf60] sm:$0xf] }
 0x631   :  { %v3376_v48 = vor.u32 %v3650_v47, %v3375_v46 }
 0x632   :  { %2382 = vmatpush.bf16.msrb.mxu3 %v3392_v33 }
 0x633   :  { %2190 = vmatpush.bf16.msra.mxu0 %v3301_v54 }
 0x634   :  { %2172 = vmatpush.bf16.msrb.mxu2 %v3265_v55  ;;  %v3097_v55 = vld [vmem:[%s5314_s4 + $0x33] ss:$8 sm:$0x7] }
 0x635   :  { %2165 = vmatmul.bf16.vlgmr.msra.gmra.mxu3 %v1745_v39  ;;  %v1749_v60 = vperm.slane %v3097_v55, 0  ;;  %v1750_v9 = vperm.slane %v3097_v55, 1  ;;  %v1751_v25 = vperm.slane %v3097_v55, 2 }
 0x636   :  { %2126 = vmatmul.bf16.vlgmr.msrb.gmra.mxu0 %v1745_v39  ;;  %v3653_v39 = vld [vmem:[%s5313_s3 + $0xfb0] sm:$0xf0] }
 0x637   :  { %v3388_v40 = vor.u32 %v3653_v39, %v3387_v37  ;;  %2396 = vmatpush.bf16.msrb.mxu0 %v3420_v53 }
 0x638   :  { %2173 = vmatpush.bf16.msrb.mxu2 %v3253_v58  ;;  %v3660_v58 = vld [vmem:[%s5313_s3 + $0x1058] sm:$0xf0] }
 0x639   :  { %2383 = vmatpush.bf16.msrb.mxu3 %v3388_v40 }
 0x63b   :  { %3339 = vmatmul.msk.bf16.vlgmr.msra.gmra.mxu2 %vm2075_vm12, %v5103_v24 }
 0x63c   :  { %2174 = vmatpush.bf16.msrb.mxu2 %v3241_v61  ;;  %v3416_v61 = vor.u32 %v3660_v58, %v3415_v57 }
 0x63d   :  { %2384 = vmatpush.bf16.msrb.mxu3 %v3384_v43 }
 0x63e   :  { %2397 = vmatpush.bf16.msrb.mxu0 %v3416_v61 }
 0x640   :  { %2175 = vmatpush.bf16.msrb.mxu2 %v3229_v63  ;;  %v3659_v63 = vld [vmem:[%s5313_s3 + $0x1040] sm:$0xf0] }
 0x641   :  { %2385 = vmatpush.bf16.msrb.mxu3 %v3380_v45  ;;  %v3412_v18 = vor.u32 %v3659_v63, %v3411_v27 }
 0x643   :  { %2398 = vmatpush.bf16.msrb.mxu0 %v3412_v18 }
 0x644   :  { %2176 = vmatpush.bf16.msrb.mxu2 %v3217_v1 }
 0x645   :  { %2386 = vmatpush.bf16.msrb.mxu3 %v3376_v48  ;;  %v2405_v48 = vlaneseq }
 0x646   :  { %3340 = vmatmul.msk.bf16.vlgmr.msra.gmra.mxu0 %vm2075_vm12, %v5103_v24 }
 0x647   :  { %v2406_v51 = vand.u32 127, %v2405_v48 }
 0x648   :  { %2177 = vmatpush.bf16.msrb.mxu2 %v3205_v4  ;;  %v3658_v4 = vld [vmem:[%s5313_s3 + $0x1028] sm:$0xf0] }
 0x649   :  { %v3408_v7 = vor.u32 %v3658_v4, %v3407_v3  ;;  %vm2427_vm14 = vcmp.lt.s32.totalorder %v2406_v51, 7  ;;  %vm2407_vm0 = vcmp.lt.s32.totalorder %v2406_v51, 4 }
 0x64b   :  { %2178 = vmatmul.bf16.vlgmr.msrb.gmra.mxu2 %v5101_v21  ;;  %v3351_v21 = vld [vmem:[%s5313_s3 + $0xed0] sm:$0xf]  ;;  %2399 = vmatpush.bf16.msrb.mxu0 %v3408_v7 }
 0x64c   :  { %v3352_v24 = vor.u32 %v3644_v23, %v3351_v21 }
 0x64e   :  { %2371 = vmatpush.bf16.msrb.mxu1 %v3352_v24 }
 0x652   :  { %2372 = vmatpush.bf16.msrb.mxu1 %v3348_v32 }
 0x656   :  { %2373 = vmatpush.bf16.msrb.mxu1 %v3344_v38  ;;  %v2239_v38 = vld [vmem:[%s5314_s4 + $0x34] ss:$0 sm:$0xff]  ;;  %s3703_s4 = smov [#allocation2]  }
 0x657   :  { %s2439_s6 = sshll.u32 %s3703_s4, 4  ;;  %s2440_s6 = int_to_ptr.vmem [resolvable:$true] %s2439_s6 }
 0x6a2   :  { %v2140_v49 = vpop.f32.mrf.mxu1 }
 0x6a3   :  { %v2114_v50 = vpop.f32.mrf.mxu0 }
 0x6a8   :  { %v2101_v54 = vpop.f32.mrf.mxu3 }
 0x6aa   :  { %v2142_v56 = vpop.f32.mrf.mxu1 }
 0x6ab   :  { %v2116_v59 = vpop.f32.mrf.mxu0 }
 0x6ae   :  { %v2088_v62 = vpop.f32.mrf.mxu2 }
 0x6af   :  { %v2089_v0 = vadd.f32 %v2088_v62, %v1749_v60 }
 0x6b0   :  { %v2103_v1 = vpop.f32.mrf.mxu3 }
 0x6b1   :  { %v2102_v2 = vadd.f32 %v2101_v54, %v2089_v0 }
 0x6b3   :  { %v2115_v5 = vadd.f32 %v2114_v50, %v2102_v2  ;;  %v2127_v6 = vpop.f32.mrf.mxu0 }
 0x6b4   :  { %v2128_v13 = vadd.f32 %v2127_v6, %v1750_v9 }
 0x6b5   :  { %v2196_v8 = vmax.f32 %v2115_v5, 0.0 }
 0x6b6   :  { %v2090_v10 = vpop.f32.mrf.mxu2  ;;  %v2141_v15 = vadd.f32 %v2140_v49, %v2128_v13 }
 0x6b7   :  { %v2240_v11 = vpack.c.bf16 %v2196_v8, %v2196_v8 }
 0x6b8   :  { %v2166_v12 = vpop.f32.mrf.mxu3 }
 0x6b9   :  { %2374 = vmatmul.bf16.vlgmr.msrb.gmra.mxu1 %v2240_v11  ;;  %v2167_v28 = vadd.f32 %v2166_v12, %v1751_v25 }
 0x6bb   :  { %v2129_v14 = vpop.f32.mrf.mxu0 }
 0x6be   :  { %v2153_v16 = vpop.f32.mrf.mxu2 }
 0x6bf   :  { %v2154_v17 = vadd.f32 %v2153_v16, %v2141_v15 }
 0x6c0   :  { %v2168_v19 = vpop.f32.mrf.mxu3 }
 0x6c1   :  { %v2197_v20 = vmax.f32 %v2154_v17, 0.0 }
 0x6c3   :  { %v2241_v21 = vpack.c.bf16 %v2197_v20, %v2197_v20  ;;  %v2192_v23 = vpop.f32.mrf.mxu0 }
 0x6c5   :  { %2387 = vmatmul.bf16.vlgmr.msrb.gmra.mxu3 %v2241_v21 }
 0x6c6   :  { %v2155_v24 = vpop.f32.mrf.mxu2 }
 0x6cb   :  { %v2194_v26 = vpop.f32.mrf.mxu0 }
 0x6ce   :  { %v2179_v29 = vpop.f32.mrf.mxu2 }
 0x6cf   :  { %v2180_v30 = vadd.f32 %v2179_v29, %v2167_v28 }
 0x6d1   :  { %v2193_v31 = vadd.f32 %v2192_v23, %v2180_v30 }
 0x6d3   :  { %v2198_v32 = vmax.f32 %v2193_v31, 0.0 }
 0x6d5   :  { %v2242_v22 = vpack.c.bf16 %v2198_v32, %v2198_v32 }
 0x6d6   :  { %v2181_v33 = vpop.f32.mrf.mxu2 }
 0x6d7   :  { %3421 = vmatmul.msk.bf16.vlgmr.msrb.gmra.mxu0 %vm2075_vm12, %v2242_v22 }
 0x736   :  { %v2375_v35 = vpop.f32.mrf.mxu1 }
 0x737   :  { %v2376_v40 = vadd.f32 %v2375_v35, %v2239_v38 }
 0x73e   :  { %v2377_v36 = vpop.f32.mrf.mxu1 }
 0x748   :  { %v2388_v37 = vpop.f32.mrf.mxu3 }
 0x749   :  { %v2389_v41 = vadd.f32 %v2388_v37, %v2376_v40 }
 0x750   :  { %v2390_v39 = vpop.f32.mrf.mxu3 }
 0x754   :  { %v2401_v34 = vpop.f32.mrf.mxu0 }
 0x755   :  { %v2402_v43 = vadd.f32 %v2401_v34, %v2389_v41 }
 0x757   :  { %v3422_v42 = vmul.f32 -1.442695, %v2402_v43  ;;  %v2428_v47 = vmul.f32 1.442695, %v2402_v43 }
 0x759   :  { %3671 = vpow2.f32 %v3422_v42 }
 0x75c   :  { %v2403_v44 = vpop.f32.mrf.mxu0 }
 0x75f   :  { %v3672_v45 = vpop.eup %3671 }
 0x760   :  { %v2411_v46 = vadd.f32 1.0, %v3672_v45 }
 0x762   :  { %3673 = vrcp.f32 %v2411_v46  ;;  %v2423_v53 = vand.u32 2147483648, %v2411_v46  ;;  %v2421_v55 = vand.u32 2147483647, %v2411_v46  ;;  %vm2417_vm15 = vweird.f32 %v2411_v46 }
 0x763   :  { %3675 = vpow2.f32 %v2428_v47 }
 0x764   :  { %v2424_v58 = vor.u32 1.1754944e-38, %v2423_v53  ;;  %vm2422_vm2 = vcmp.eq.f32.partialorder %v2421_v55, 8.507059e+37 }
 0x768   :  { %v3674_v49 = vpop.eup %3673 }
 0x769   :  { %v2413_v50 = vmul.f32 %v3674_v49, %v2411_v46  ;;  %vm2418_vm13 = vweird.f32 %v3674_v49  ;;  %v3676_v56 = vpop.eup %3675 }
 0x76a   :  { %vm2419_vm1 = vmor %vm2417_vm15, %vm2418_vm13  ;;  %v2430_v60 = vsel %vm2427_vm14, %v3676_v56, %v2402_v43 }
 0x76b   :  { %v2414_v52 = vsub.f32 1.0, %v2413_v50 }
 0x76d   :  { %v2415_v54 = vmul.f32 %v3674_v49, %v2414_v52 }
 0x76f   :  { %v2416_v57 = vadd.f32 %v3674_v49, %v2415_v54 }
 0x771   :  { %v2420_v59 = vsel %vm2419_vm1, %v3674_v49, %v2416_v57 }
 0x772   :  { %v2425_v61 = vsel %vm2422_vm2, %v2424_v58, %v2420_v59 }
 0x773   :  { %v2431_v62 = vsel %vm2407_vm0, %v2425_v61, %v2430_v60 }
 0x774   :  { %2433 = vst.msk [vmem:[#allocation2] sm:$0xff] %vm2432_vm3, %v2431_v62 }
 0x775   :  { %2444 = dma.vmem_to_hbm [thread:$0]  %s2440_s6, 128, %s2442_s9, [#allocation3]  }
 0x776   :  { %3701 = dma.done.wait [#allocation3], 128  }
 0x777   :  { %3702 = vsyncadd [#allocation3], 4294967168 }
 0x778   :  { %2449 = vsyncpa [#allocation3], 1 }

</bundles_post_ra>
